<compile_context>
chip_gen: v6e
topology: v6e:2x2x1
jax: 0.10.0
libtpu: 0.0.40
codegen_flags: <defaults>
</compile_context>

<pallas_src>
import jax
import jax.numpy as jnp
import numpy as np
from jax.experimental import pallas as pl
from jax.experimental.pallas import tpu as pltpu


# ----------------------------------------------------------------------------- kernel

def _cbam_kernel(x_ref, w1t_ref, w2t_ref, sa_cat_ref, wd1_ref, wd2_ref, bd_ref, y_ref):
    """Processes Bt images per grid step, channels-last.

    x_ref      : (Bt, HW, C)  f32   input features (channels-last, row-major spatial)
    w1t_ref    : (C, C//r)    bf16  ChannelAttention.fc1 weight, transposed
    w2t_ref    : (C//r, C)    bf16  ChannelAttention.fc2 weight, transposed
    sa_cat_ref : (HW, 2*HW)   f32   [7x7 conv stencil for avg-ch | for max-ch] as dense matrix
    wd1_ref    : (C, C)       bf16  channeldown weight rows for x_sa   (w_cd[:, :C].T)
    wd2_ref    : (C, C)       bf16  channeldown weight rows for origin (w_cd[:, C:].T)
    bd_ref     : (1, C)       f32   channeldown bias
    y_ref      : (Bt, HW, C)  f32   output
    """
    x = x_ref[...]                                   # (Bt, HW, C) f32
    Bt, HW, C = x.shape
    x_bf = x.astype(jnp.bfloat16)                    # reused as residual-path MXU operand

    # ---- ChannelAttention: avg/max over spatial, shared MLP (fused into 2 matmuls), sigmoid
    avg_c = jnp.mean(x, axis=1)                      # (Bt, C) f32
    max_c = jnp.max(x, axis=1)                       # (Bt, C) f32
    pooled = jnp.concatenate([avg_c, max_c], axis=0).astype(jnp.bfloat16)   # (2Bt, C)
    h = jnp.maximum(
        jnp.dot(pooled, w1t_ref[...], preferred_element_type=jnp.float32), 0.0)   # (2Bt, C//r)
    mlp = jnp.dot(h.astype(jnp.bfloat16), w2t_ref[...],
                  preferred_element_type=jnp.float32)                             # (2Bt, C)
    ca = jax.nn.sigmoid(mlp[:Bt] + mlp[Bt:])                                      # (Bt, C) f32
    x_ca = x * ca[:, None, :]                                                     # (Bt, HW, C)

    # ---- SpatialAttention: mean/max over channels, 7x7 conv via VPU multiply + lane-sum, sigmoid
    avg_s = jnp.mean(x_ca, axis=2)                               # (Bt, HW)
    max_s = jnp.max(x_ca, axis=2)                                # (Bt, HW)
    sa_vec = jnp.concatenate([avg_s, max_s], axis=1)             # (Bt, 2HW)
    sa_logits = jnp.sum(sa_cat_ref[...][None, :, :] * sa_vec[:, None, :],
                        axis=-1)                                 # (Bt, HW)
    sa = jax.nn.sigmoid(sa_logits)                               # (Bt, HW)

    # x_sa goes straight to bf16 -- no extra f32 full-tile materialization.
    x_sa = (x_ca * sa[:, :, None]).astype(jnp.bfloat16)          # (Bt, HW, C) bf16

    # ---- channeldown: two K=C matmuls (no concat materialization) + bias
    xs2 = x_sa.reshape(Bt * HW, C)
    xr2 = x_bf.reshape(Bt * HW, C)
    y = (jnp.dot(xs2, wd1_ref[...], preferred_element_type=jnp.float32)
         + jnp.dot(xr2, wd2_ref[...], preferred_element_type=jnp.float32)
         + bd_ref[...])                                          # (Bt*HW, C) f32
    y_ref[...] = y.reshape(Bt, HW, C)


# ----------------------------------------------------------------------------- glue

def _conv7x7_as_matmul(w_kk, H, W, pad=3):
    """Dense (HW, HW) matrix M with out_flat = M @ in_flat for a single-channel KxK conv, stride 1."""
    K = w_kk.shape[0]
    HW = H * W
    M = np.zeros((HW, HW), np.float32)
    for i in range(H):
        for j in range(W):
            for ki in range(K):
                for kj in range(K):
                    a, b = i + ki - pad, j + kj - pad
                    if 0 <= a < H and 0 <= b < W:
                        M[i * W + j, a * W + b] += float(w_kk[ki, kj])
    return M


def prepare_cbam_params(params, H, W):
    """One-time host-side weight prep: transposes, bf16 casts, 7x7 stencil matrix."""
    w_fc1, w_fc2, w_sa, w_cd, b_cd = params
    C = int(np.asarray(w_fc2).shape[0])

    w1t = jnp.asarray(np.asarray(w_fc1).T, jnp.bfloat16)          # (C, C//r)
    w2t = jnp.asarray(np.asarray(w_fc2).T, jnp.bfloat16)          # (C//r, C)
    wsa = np.asarray(w_sa)
    sa_cat = jnp.asarray(np.concatenate(
        [_conv7x7_as_matmul(wsa[0, 0], H, W),
         _conv7x7_as_matmul(wsa[0, 1], H, W)], axis=1), jnp.float32)   # (HW, 2HW)
    wcd = np.asarray(w_cd)                                         # (C, 2C)
    wd1 = jnp.asarray(wcd[:, :C].T, jnp.bfloat16)                  # (C, C) for x_sa
    wd2 = jnp.asarray(wcd[:, C:].T, jnp.bfloat16)                  # (C, C) for origin x
    bd = jnp.asarray(np.asarray(b_cd).reshape(1, C), jnp.float32)  # (1, C)
    return (w1t, w2t, sa_cat, wd1, wd2, bd)


def _nbytes(a):
    return int(np.prod(a.shape)) * jnp.dtype(a.dtype).itemsize


def _pick_bt(B, HW, C, vmem_cap, resident_bytes):
    """Batch-tile selection.

    * 128 MiB chips (v5e/v6e, single TensorCore): fill the MXU M dimension (Bt*HW >= ~512);
      a single grid step is fine.
    * 64 MiB chips (v7x, 2 TensorCores): keep the block small enough to sit next to the
      single-buffered weights and prefer an even grid-step count so the "parallel" axis
      splits evenly across the two cores.
    """
    big_vmem = vmem_cap >= (100 << 20)
    target_rows = 512 if big_vmem else 256
    divisors = [d for d in range(1, B + 1) if B % d == 0]

    def fits(d):
        blk = d * HW * C * 4          # one f32 block
        # double-buffered in/out blocks + ~4 block-sized elementwise intermediates + headroom
        return resident_bytes + 8 * blk + (8 << 20) <= vmem_cap - (4 << 20)

    def good_steps(d):
        steps = B // d
        if big_vmem:
            return True
        return steps >= 2 and steps % 2 == 0

    cands = ([d for d in divisors if fits(d) and good_steps(d)]
             or [d for d in divisors if fits(d)]
             or [1])
    for d in cands:
        if d * HW >= target_rows:
            return d
    return cands[-1]


def _resident_spec(shape):
    """Full-array BlockSpec with a constant index_map; single-buffered (block never changes)."""
    n = len(shape)
    idx = lambda *args, _n=n: (0,) * _n
    try:
        return pl.BlockSpec(shape, idx, pipeline_mode=pl.Buffered(1))
    except (TypeError, AttributeError):   # fallback for runtimes without pipeline_mode
        return pl.BlockSpec(shape, idx)


@jax.jit
def cbam_block_forward(x_nchw, prepared):
    """Pallas implementation of cbam_block.forward.  x_nchw: (B, C, H, W) f32 -> (B, C, H, W) f32."""
    w1t, w2t, sa_cat, wd1, wd2, bd = prepared
    B, C, H, W = x_nchw.shape
    HW = H * W
    Cr = w1t.shape[1]

    try:
        vmem_cap = int(pltpu.get_tpu_info().vmem_capacity_bytes)
    except Exception:
        vmem_cap = 64 << 20            # conservative fallback (v7x-sized)

    resident = sum(_nbytes(a) for a in (w1t, w2t, sa_cat, wd1, wd2, bd))
    Bt = _pick_bt(B, HW, C, vmem_cap, resident)
    grid = (B // Bt,)

    block_bytes = Bt * HW * C * 4
    vmem_limit = int(min(vmem_cap - (4 << 20),
                         max(32 << 20, resident + 8 * block_bytes + (8 << 20))))

    # channels-last flattening (matches torch NCHW semantics; see TODO at top of file).
    # NOTE: feeding x as bf16 would halve input HBM traffic further; kept f32 so the spatial
    # mean/max pooling stays exact.
    x = jnp.transpose(x_nchw, (0, 2, 3, 1)).reshape(B, HW, C).astype(jnp.float32)

    cost = pl.CostEstimate(
        flops=int(4 * B * HW * C * C            # channeldown (two K=C matmuls)
                  + 8 * B * C * Cr              # channel-attention MLP
                  + 4 * B * HW * HW),           # 7x7 stencil multiply-reduce
        transcendentals=int(B * C + B * HW),    # sigmoids
        bytes_accessed=int(2 * B * HW * C * 4 + resident))

    y = pl.pallas_call(
        _cbam_kernel,
        out_shape=jax.ShapeDtypeStruct((B, HW, C), jnp.float32),
        grid=grid,
        in_specs=[
            pl.BlockSpec((Bt, HW, C), lambda b: (b, 0, 0)),
            _resident_spec(w1t.shape),
            _resident_spec(w2t.shape),
            _resident_spec(sa_cat.shape),
            _resident_spec(wd1.shape),
            _resident_spec(wd2.shape),
            _resident_spec(bd.shape),
        ],
        out_specs=pl.BlockSpec((Bt, HW, C), lambda b: (b, 0, 0)),
        compiler_params=pltpu.CompilerParams(
            dimension_semantics=("parallel",),
            vmem_limit_bytes=vmem_limit),
        cost_estimate=cost,
    )(x, w1t, w2t, sa_cat, wd1, wd2, bd)

    # back to NCHW like the PyTorch module's output
    return jnp.transpose(y.reshape(B, H, W, C), (0, 3, 1, 2))


# ----------------------------------------------------------------------------- reference (plain JAX)

def reference_cbam(x, params):
    w_fc1, w_fc2, w_sa, w_cd, b_cd = params

    avg = jnp.mean(x, axis=(2, 3))
    mx = jnp.max(x, axis=(2, 3))

    def mlp(v):
        return jnp.maximum(v @ w_fc1.T, 0.0) @ w_fc2.T

    ca = jax.nn.sigmoid(mlp(avg) + mlp(mx))[:, :, None, None]
    xc = x * ca

    sa_in = jnp.stack([jnp.mean(xc, axis=1), jnp.max(xc, axis=1)], axis=1)
    sa = jax.lax.conv_general_dilated(
        sa_in, w_sa, (1, 1), ((3, 3), (3, 3)),
        dimension_numbers=("NCHW", "OIHW", "NCHW"))
    sa = jax.nn.sigmoid(sa)
    xs = xc * sa

    cat = jnp.concatenate([xs, x], axis=1)                       # (B, 2C, H, W)
    y = jnp.einsum("bihw,oi->bohw", cat, w_cd) + b_cd[None, :, None, None]
    return y


# ----------------------------------------------------------------------------- main

if __name__ == "__main__":
    B, C, H, W = 4, 64, 8, 8          # small stand-in for the (B, 2048, 7, 7) production shape
    ratio, K = 8, 7

    key = jax.random.PRNGKey(0)
    k1, k2, k3, k4, k5, kx = jax.random.split(key, 6)
    w_fc1 = jax.random.normal(k1, (C // ratio, C), jnp.float32) * 0.1   # fc1: Conv2d(C, C/8, 1, no bias)
    w_fc2 = jax.random.normal(k2, (C, C // ratio), jnp.float32) * 0.1   # fc2: Conv2d(C/8, C, 1, no bias)
    w_sa = jax.random.normal(k3, (1, 2, K, K), jnp.float32) * 0.1       # SpatialAttention conv (OIHW)
    w_cd = jax.random.normal(k4, (C, 2 * C), jnp.float32) * 0.05        # channeldown: Conv2d(2C, C, 1)
    b_cd = jax.random.normal(k5, (C,), jnp.float32) * 0.01
    params = (w_fc1, w_fc2, w_sa, w_cd, b_cd)

    x = jax.random.normal(kx, (B, C, H, W), jnp.float32)

    prepared = prepare_cbam_params(params, H, W)                 # one-time weight prep
    y = jax.block_until_ready(cbam_block_forward(x, prepared))

    y_ref = reference_cbam(x, params)
    # bf16 matmul operands with f32 accumulation -> tolerance loosened vs. pure-f32
    np.testing.assert_allclose(np.asarray(y), np.asarray(y_ref), rtol=2e-2, atol=2e-2)
    assert y.shape == (B, C, H, W)

    print("KERNEL_OK")
</pallas_src>

<mosaic_0001>
module attributes {stable_mosaic.version = 11 : i64} {
  func.func @_cbam_kernel(%arg0: i32, %arg1: memref<2x64x64xf32, #tpu.memory_space<vmem>>, %arg2: memref<64x8xbf16, #tpu.memory_space<vmem>>, %arg3: memref<8x64xbf16, #tpu.memory_space<vmem>>, %arg4: memref<64x128xf32, #tpu.memory_space<vmem>>, %arg5: memref<64x64xbf16, #tpu.memory_space<vmem>>, %arg6: memref<64x64xbf16, #tpu.memory_space<vmem>>, %arg7: memref<1x64xf32, #tpu.memory_space<vmem>>, %arg8: memref<2x64x64xf32, #tpu.memory_space<vmem>>) attributes {dimension_semantics = [#tpu.dimension_semantics<parallel>], iteration_bounds = array<i64: 2>, scalar_prefetch = 0 : i64, scratch_operands = 0 : i64, tpu.core_type = #tpu.core_type<tc>, window_params = [{transform_indices = @transform_0, window_bounds = array<i64: 2, 64, 64>}, {pipeline_mode = #tpu.pipeline_mode<synchronous>, transform_indices = @transform_1, window_bounds = array<i64: 64, 8>}, {pipeline_mode = #tpu.pipeline_mode<synchronous>, transform_indices = @transform_2, window_bounds = array<i64: 8, 64>}, {pipeline_mode = #tpu.pipeline_mode<synchronous>, transform_indices = @transform_3, window_bounds = array<i64: 64, 128>}, {pipeline_mode = #tpu.pipeline_mode<synchronous>, transform_indices = @transform_4, window_bounds = array<i64: 64, 64>}, {pipeline_mode = #tpu.pipeline_mode<synchronous>, transform_indices = @transform_5, window_bounds = array<i64: 64, 64>}, {pipeline_mode = #tpu.pipeline_mode<synchronous>, transform_indices = @transform_6, window_bounds = array<i64: 1, 64>}, {transform_indices = @transform_7, window_bounds = array<i64: 2, 64, 64>}]} {
    %c0 = arith.constant 0 : index
    %c0_0 = arith.constant 0 : index
    %c0_1 = arith.constant 0 : index
    %0 = vector.load %arg1[%c0, %c0_0, %c0_1] : memref<2x64x64xf32, #tpu.memory_space<vmem>>, vector<2x64x64xf32>
    %1 = arith.truncf %0 : vector<2x64x64xf32> to vector<2x64x64xbf16>
    %cst = arith.constant dense<0.000000e+00> : vector<2x64xf32>
    %2 = vector.multi_reduction <add>, %0, %cst [1] : vector<2x64x64xf32> to vector<2x64xf32>
    %cst_2 = arith.constant 6.400000e+01 : f32
    %3 = vector.broadcast %cst_2 : f32 to vector<2x64xf32>
    %4 = arith.divf %2, %3 : vector<2x64xf32>
    %cst_3 = arith.constant dense<0xFF800000> : vector<2x64xf32>
    %5 = vector.multi_reduction <maximumf>, %0, %cst_3 [1] : vector<2x64x64xf32> to vector<2x64xf32>
    %6 = tpu.concatenate %4, %5 in 0 : vector<2x64xf32>, vector<2x64xf32> -> vector<4x64xf32>
    %7 = arith.truncf %6 : vector<4x64xf32> to vector<4x64xbf16>
    %c0_4 = arith.constant 0 : index
    %c0_5 = arith.constant 0 : index
    %8 = vector.load %arg2[%c0_4, %c0_5] : memref<64x8xbf16, #tpu.memory_space<vmem>>, vector<64x8xbf16>
    %cst_6 = arith.constant dense<0.000000e+00> : vector<4x8xf32>
    %9 = tpu.matmul %7, %8, %cst_6 {dimension_numbers = #tpu.dot_dimension_numbers<[1], [0], [0], [1], [0, 0, 1, 1], [], []>} : vector<4x64xbf16>, vector<64x8xbf16>, vector<4x8xf32> -> vector<4x8xf32>
    %cst_7 = arith.constant 0.000000e+00 : f32
    %10 = vector.broadcast %cst_7 : f32 to vector<4x8xf32>
    %11 = arith.maximumf %9, %10 : vector<4x8xf32>
    %12 = arith.truncf %11 : vector<4x8xf32> to vector<4x8xbf16>
    %c0_8 = arith.constant 0 : index
    %c0_9 = arith.constant 0 : index
    %13 = vector.load %arg3[%c0_8, %c0_9] : memref<8x64xbf16, #tpu.memory_space<vmem>>, vector<8x64xbf16>
    %cst_10 = arith.constant dense<0.000000e+00> : vector<4x64xf32>
    %14 = tpu.matmul %12, %13, %cst_10 {dimension_numbers = #tpu.dot_dimension_numbers<[1], [0], [0], [1], [0, 0, 1, 1], [], []>} : vector<4x8xbf16>, vector<8x64xbf16>, vector<4x64xf32> -> vector<4x64xf32>
    %15 = vector.extract_strided_slice %14 {offsets = [0, 0], sizes = [2, 64], strides = [1, 1]} : vector<4x64xf32> to vector<2x64xf32>
    %16 = vector.extract_strided_slice %14 {offsets = [2, 0], sizes = [2, 64], strides = [1, 1]} : vector<4x64xf32> to vector<2x64xf32>
    %17 = arith.addf %15, %16 : vector<2x64xf32>
    %18 = arith.negf %17 : vector<2x64xf32>
    %19 = math.exp %18 : vector<2x64xf32>
    %cst_11 = arith.constant 1.000000e+00 : f32
    %20 = vector.broadcast %cst_11 : f32 to vector<2x64xf32>
    %21 = arith.addf %20, %19 : vector<2x64xf32>
    %22 = arith.divf %20, %21 : vector<2x64xf32>
    %23 = vector.shape_cast %22 : vector<2x64xf32> to vector<2x1x64xf32>
    %24 = vector.broadcast %23 : vector<2x1x64xf32> to vector<2x64x64xf32>
    %25 = arith.mulf %0, %24 : vector<2x64x64xf32>
    %cst_12 = arith.constant dense<0.000000e+00> : vector<2x64xf32>
    %26 = vector.multi_reduction <add>, %25, %cst_12 [2] : vector<2x64x64xf32> to vector<2x64xf32>
    %cst_13 = arith.constant 6.400000e+01 : f32
    %27 = vector.broadcast %cst_13 : f32 to vector<2x64xf32>
    %28 = arith.divf %26, %27 : vector<2x64xf32>
    %cst_14 = arith.constant dense<0xFF800000> : vector<2x64xf32>
    %29 = vector.multi_reduction <maximumf>, %25, %cst_14 [2] : vector<2x64x64xf32> to vector<2x64xf32>
    %30 = tpu.concatenate %28, %29 in 1 : vector<2x64xf32>, vector<2x64xf32> -> vector<2x128xf32>
    %c0_15 = arith.constant 0 : index
    %c0_16 = arith.constant 0 : index
    %31 = vector.load %arg4[%c0_15, %c0_16] : memref<64x128xf32, #tpu.memory_space<vmem>>, vector<64x128xf32>
    %32 = vector.shape_cast %31 : vector<64x128xf32> to vector<1x64x128xf32>
    %33 = vector.shape_cast %30 : vector<2x128xf32> to vector<2x1x128xf32>
    %34 = vector.broadcast %32 : vector<1x64x128xf32> to vector<2x64x128xf32>
    %35 = vector.broadcast %33 : vector<2x1x128xf32> to vector<2x64x128xf32>
    %36 = arith.mulf %34, %35 : vector<2x64x128xf32>
    %cst_17 = arith.constant dense<0.000000e+00> : vector<2x64xf32>
    %37 = vector.multi_reduction <add>, %36, %cst_17 [2] : vector<2x64x128xf32> to vector<2x64xf32>
    %38 = arith.negf %37 : vector<2x64xf32>
    %39 = math.exp %38 : vector<2x64xf32>
    %cst_18 = arith.constant 1.000000e+00 : f32
    %40 = vector.broadcast %cst_18 : f32 to vector<2x64xf32>
    %41 = arith.addf %40, %39 : vector<2x64xf32>
    %42 = arith.divf %40, %41 : vector<2x64xf32>
    %43 = vector.shape_cast %42 : vector<2x64xf32> to vector<2x64x1xf32>
    %44 = vector.broadcast %43 : vector<2x64x1xf32> to vector<2x64x64xf32>
    %45 = arith.mulf %25, %44 : vector<2x64x64xf32>
    %46 = arith.truncf %45 : vector<2x64x64xf32> to vector<2x64x64xbf16>
    %47 = vector.shape_cast %46 : vector<2x64x64xbf16> to vector<128x64xbf16>
    %48 = vector.shape_cast %1 : vector<2x64x64xbf16> to vector<128x64xbf16>
    %c0_19 = arith.constant 0 : index
    %c0_20 = arith.constant 0 : index
    %49 = vector.load %arg5[%c0_19, %c0_20] : memref<64x64xbf16, #tpu.memory_space<vmem>>, vector<64x64xbf16>
    %cst_21 = arith.constant dense<0.000000e+00> : vector<128x64xf32>
    %50 = tpu.matmul %47, %49, %cst_21 {dimension_numbers = #tpu.dot_dimension_numbers<[1], [0], [0], [1], [0, 0, 1, 1], [], []>} : vector<128x64xbf16>, vector<64x64xbf16>, vector<128x64xf32> -> vector<128x64xf32>
    %c0_22 = arith.constant 0 : index
    %c0_23 = arith.constant 0 : index
    %51 = vector.load %arg6[%c0_22, %c0_23] : memref<64x64xbf16, #tpu.memory_space<vmem>>, vector<64x64xbf16>
    %cst_24 = arith.constant dense<0.000000e+00> : vector<128x64xf32>
    %52 = tpu.matmul %48, %51, %cst_24 {dimension_numbers = #tpu.dot_dimension_numbers<[1], [0], [0], [1], [0, 0, 1, 1], [], []>} : vector<128x64xbf16>, vector<64x64xbf16>, vector<128x64xf32> -> vector<128x64xf32>
    %53 = arith.addf %50, %52 : vector<128x64xf32>
    %c0_25 = arith.constant 0 : index
    %c0_26 = arith.constant 0 : index
    %54 = vector.load %arg7[%c0_25, %c0_26] : memref<1x64xf32, #tpu.memory_space<vmem>>, vector<1x64xf32>
    %55 = vector.broadcast %54 : vector<1x64xf32> to vector<128x64xf32>
    %56 = arith.addf %53, %55 : vector<128x64xf32>
    %57 = vector.shape_cast %56 : vector<128x64xf32> to vector<2x64x64xf32>
    %c0_27 = arith.constant 0 : index
    %c0_28 = arith.constant 0 : index
    %c0_29 = arith.constant 0 : index
    %58 = vector.load %arg8[%c0_27, %c0_28, %c0_29] : memref<2x64x64xf32, #tpu.memory_space<vmem>>, vector<2x64x64xf32>
    tpu.vector_store %arg8[%c0_27, %c0_28, %c0_29], %57 {strides = array<i32>} : memref<2x64x64xf32, #tpu.memory_space<vmem>>, vector<2x64x64xf32>,
    return
  }
  func.func @transform_0(%arg0: i32) -> (i32, i32, i32) {
    %c0_i32 = arith.constant 0 : i32
    %c0_i32_0 = arith.constant 0 : i32
    %c0_i32_1 = arith.constant 0 : i32
    return %arg0, %c0_i32, %c0_i32_0 : i32, i32, i32
  }
  func.func @transform_1(%arg0: i32) -> (i32, i32) {
    %c0_i32 = arith.constant 0 : i32
    %c0_i32_0 = arith.constant 0 : i32
    %c0_i32_1 = arith.constant 0 : i32
    return %c0_i32, %c0_i32_0 : i32, i32
  }
  func.func @transform_2(%arg0: i32) -> (i32, i32) {
    %c0_i32 = arith.constant 0 : i32
    %c0_i32_0 = arith.constant 0 : i32
    %c0_i32_1 = arith.constant 0 : i32
    return %c0_i32, %c0_i32_0 : i32, i32
  }
  func.func @transform_3(%arg0: i32) -> (i32, i32) {
    %c0_i32 = arith.constant 0 : i32
    %c0_i32_0 = arith.constant 0 : i32
    %c0_i32_1 = arith.constant 0 : i32
    return %c0_i32, %c0_i32_0 : i32, i32
  }
  func.func @transform_4(%arg0: i32) -> (i32, i32) {
    %c0_i32 = arith.constant 0 : i32
    %c0_i32_0 = arith.constant 0 : i32
    %c0_i32_1 = arith.constant 0 : i32
    return %c0_i32, %c0_i32_0 : i32, i32
  }
  func.func @transform_5(%arg0: i32) -> (i32, i32) {
    %c0_i32 = arith.constant 0 : i32
    %c0_i32_0 = arith.constant 0 : i32
    %c0_i32_1 = arith.constant 0 : i32
    return %c0_i32, %c0_i32_0 : i32, i32
  }
  func.func @transform_6(%arg0: i32) -> (i32, i32) {
    %c0_i32 = arith.constant 0 : i32
    %c0_i32_0 = arith.constant 0 : i32
    %c0_i32_1 = arith.constant 0 : i32
    return %c0_i32, %c0_i32_0 : i32, i32
  }
  func.func @transform_7(%arg0: i32) -> (i32, i32, i32) {
    %c0_i32 = arith.constant 0 : i32
    %c0_i32_0 = arith.constant 0 : i32
    %c0_i32_1 = arith.constant 0 : i32
    return %arg0, %c0_i32, %c0_i32_0 : i32, i32, i32
  }
}

</mosaic_0001>

<bundles_post_ra>
// kernel: cbam_block_forward.1
= control target key start
LH: loop header
LB: loop body
LE: loop exit
PB: predicated region body
PF: predicated region fallthrough
CT: control target
= control target key end

     0   :  { %s2882_s0 = inlined_call_operand.hbm [shape: f32[4,64,64], index: 0, kind: input, shape index: {}]   ;;  %s2883_s1 = inlined_call_operand.vmem [shape: bf16[64,8], index: 1, kind: input, shape index: {}]   ;;  %s2884_s2 = inlined_call_operand.vmem [shape: bf16[8,64], index: 2, kind: input, shape index: {}]   ;;  %s2885_s3 = inlined_call_operand.hbm [shape: f32[64,128], index: 3, kind: input, shape index: {}]   ;;  %s2886_s4 = inlined_call_operand.vmem [shape: bf16[64,64], index: 4, kind: input, shape index: {}]   ;;  %s2887_s5 = inlined_call_operand.hbm [shape: bf16[64,64], index: 5, kind: input, shape index: {}]   ;;  %s2888_s6 = inlined_call_operand.vmem [shape: f32[1,64], index: 6, kind: input, shape index: {}]   ;;  %s2889_s7 = inlined_call_operand.hbm [shape: f32[4,64,64], index: 7, kind: output, shape index: {}]  }
   0x1   :  { %2918 = sst [smem:[#allocation34_spill]] %s2885_s3 }
   0x2   :  { %12 = vsyncpa [#allocation3], 0 }
   0x3   :  { %14 = vsyncpa [#allocation3 + $0x1], 0 }
   0x4   :  { %15 = vsyncpa [#allocation6], 0 }
   0x5   :  { %16 = vsyncpa [#allocation4], 0 }
   0x6   :  { %18 = vsyncpa [#allocation4 + $0x1], 0  ;;  %s2165_s24 = smov 0   ;;  %s2167_s25 = smov 0  }
   0x7   :  { %s2169_s26 = smov 0   ;;  %s2171_s27 = smov 0  }
   0x8 LB: > { %s2186_s28 = sadd.s32 4294967295, %s2110_s27   ;;  %s1637_s29 = sadd.s32 4294967294, %s2110_s27   ;;  %s2110_s27 = sphi %s2171_s27, %s2982_s27   ;;  %s2106_s26 = sphi %s2169_s26, %s2981_s26   ;;  %s2102_s25 = sphi %s2167_s25, %s2980_s25   ;;  %s2098_s24 = sphi %s2165_s24, %s2979_s24  }
   0x9   : > { %p44_p0 = scmp.ne.s32.totalorder %s2102_s25, %s2098_s24  ;;  %p2891_p1 = scmp.eq.s32.totalorder %s2186_s28, 0 }
   0xa   : > { %p194_p2 = scmp.eq.s32.totalorder %s2186_s28, 1  ;;  %p200_p3 = scmp.eq.s32.totalorder %s1637_s29, 1 }
   0xb   : > { %p2195_p4 = por %p2891_p1, %p44_p0  ;;  %p1638_p5 = scmp.ge.s32.totalorder %s2110_s27, 1 }
   0xc   : > { %p2200_p6 = por %p200_p3, %p44_p0  ;;  %p207_p7 = scmp.lt.s32.totalorder %s2110_s27, 3 }
   0xd   : > { %s2919_s30 = scalar_select %p2195_p4, 1, 0 }
   0xe   : > { %s2920_s8 = scalar_select %p2200_p6, 1, 0 }
   0xf   : > { %p2205_p8 = pnand %p1638_p5, %p207_p7  ;;  %s2112_s10 = smov [#allocation5]  }
  0x10   : > { %s225_s11 = sshll.u32 %s2112_s10, 4  ;;  %s2113_s13 = smov [#allocation7]   ;;  %s226_s11 = int_to_ptr.vmem [resolvable:$true] %s225_s11 }
  0x11   : > { %s2921_s9 = scalar_select %p2205_p8, 1, 0 }
  0x12   : > { %p1818_p9 = pneg %p2205_p8  ;;  %s241_s14 = sshll.u32 %s2113_s13, 4  ;;  %s242_s14 = int_to_ptr.vmem [resolvable:$true] %s241_s14 }
  0x13   : > { %s1973_s15 = scalar_lea.vmem %s226_s11, 1024  ;;  %p1981_p5 = scmp.lt.s32.totalorder %s226_s11, %s226_s11 }
  0x14   : > { %p2214_p11 = pnand %p1818_p9, %p2891_p1  ;;  %p1974_p13 = scmp.ne.s32.totalorder %s226_s11, %s1973_s15 }
  0x15   : > { %p1982_p7 = scmp.lt.s32.totalorder %s1973_s15, %s1973_s15 }
  0x16   : > { %p1964_p12 = pneg %p2214_p11 }
  0x17   : > { %p1983_p10 = por %p1982_p7, %p1981_p5 }
  0x18   : > { %p1976_p0 = pnand %p1974_p13, %p1964_p12 }
  0x1a   : > { %p1977_p3 = pneg %p1976_p0 }
  0x1c   : > { %p1984_p9 = pnand %p1983_p10, %p1977_p3 }
  0x1e   : > { %1987 = shalt.err (!%p1984_p9)
}
  0x1f   : > { %s2890_s16 = smov 128   ;;  %s2892_s17 = smov 8  }
  0x20   : > { %s2923_s3 = sld [smem:[#allocation34_spill]]  ;;  %s1999_s20 = scalar_lea.vmem %s242_s14, 512 }
  0x21   : > { %p2000_p13 = scmp.ne.s32.totalorder %s242_s14, %s1999_s20  ;;  %p2007_p10 = scmp.lt.s32.totalorder %s242_s14, %s242_s14 }
  0x22   : > { %p2008_p3 = scmp.lt.s32.totalorder %s1999_s20, %s1999_s20 }
  0x23   : > { %p2002_p0 = pnand %p2000_p13, %p1964_p12 }
  0x24   : > { %p2009_p7 = por %p2008_p3, %p2007_p10 }
  0x25   : > { %p2003_p5 = pneg %p2002_p0 }
  0x26   : > { %1821 = dma.hbm_to_vmem [thread:$0]  (!%p2214_p11), %s2923_s3, 1024, %s226_s11, [#allocation6], %s2890_s16, %s2890_s16, %s2892_s17  }
  0x27   : > { %p2010_p9 = pnand %p2009_p7, %p2003_p5 }
  0x29   : > { %2013 = shalt.err (!%p2010_p9)
}
  0x2a   : > { %s2116_s21 = smov 64   ;;  %s2117_s22 = smov 4  }
  0x2b   : > { %1824 = dma.hbm_to_vmem [thread:$0]  (!%p2214_p11), %s2887_s5, 512, %s242_s14, [#allocation6], %s2116_s21, %s2116_s21, %s2117_s22  }
  0x2c   : > { %s2240_s10 = sadd.s32 1, %s2110_s27   ;;  %s31_s13 = sadd.s32 1, %s2106_s26 }
  0x2d   : > { %s28_s11 = ssub.s32 %s2110_s27, %s2240_s10  ;;  %p38_p13 = scmp.ne.s32.totalorder %s2106_s26, %s2102_s25 }
  0x2e   : > { %p29_p12 = scmp.eq.s32.totalorder %s28_s11, 0  ;;  %p39_p0 = scmp.eq.s32.totalorder %s2110_s27, 0 }
  0x2f   : > { %p2253_p10 = por %p194_p2, %p38_p13  ;;  %p1835_p3 = scmp.lt.s32.totalorder %s2110_s27, 2 }
  0x30   : > { %s2249_s15 = scalar_select %p29_p12, %s2106_s26, %s31_s13  }
  0x31   : > { %p40_p5 = por %p39_p0, %p38_p13  ;;  %s258_s12 = sand.u32 1, %s2106_s26  }
  0x32   : > { %s2924_s18 = scalar_select %p2253_p10, 1, 0 }
  0x33   : > { %s1642_s19 = sshll.u32 %s258_s12, 7  ;;  %s1706_s14 = sshll.u32 %s2110_s27, 11 }
  0x34   : > { %s2263_s22 = scalar_lea.hbm %s2882_s0, %s1706_s14  ;;  %s262_s23 = scalar_lea.vmem [#allocation2], %s1642_s19 }
  0x35   : > { %s270_s29 = sshll.u32 %s262_s23, 4  ;;  %p2267_p2 = pnand %p1835_p3, %p40_p5  ;;  %s2265_s29 = int_to_ptr.vmem [resolvable:$true] %s270_s29 }
  0x36   : > { %s2271_s13 = scalar_lea.sflag [#allocation3], %s258_s12  ;;  %s2014_s16 = scalar_lea.hbm %s2263_s22, 2048 }
  0x37   : > { %p2015_p11 = scmp.ne.s32.totalorder %s2263_s22, %s2014_s16  ;;  %p2016_p7 = pneg %p2267_p2 }
  0x38   : > { %s2019_s19 = scalar_lea.hbm %s2882_s0, 4096  ;;  %p2020_p13 = scmp.lt.s32.totalorder %s2263_s22, %s2882_s0 }
  0x39   : > { %p2017_p9 = pnand %p2016_p7, %p2015_p11  ;;  %p2021_p0 = scmp.lt.s32.totalorder %s2019_s19, %s2014_s16 }
  0x3b   : > { %p2018_p12 = pneg %p2017_p9  ;;  %p2022_p5 = por %p2021_p0, %p2020_p13 }
  0x3d   : > { %p2023_p3 = pnand %p2022_p5, %p2018_p12 }
  0x3f   : > { %2026 = shalt.err (!%p2023_p3)
}
  0x40   : > { %s2027_s12 = scalar_lea.vmem %s2265_s29, 2048  ;;  %s2118_s17 = smov [#allocation2]  }
  0x41   : > { %p2028_p1 = scmp.ne.s32.totalorder %s2265_s29, %s2027_s12  ;;  %s2032_s3 = sshll.u32 %s2118_s17, 4  ;;  %s2033_s3 = int_to_ptr.vmem [resolvable:$false] %s2032_s3 }
  0x42   : > { %s2034_s14 = scalar_lea.vmem %s2033_s3, 4096  ;;  %p2035_p9 = scmp.lt.s32.totalorder %s2265_s29, %s2033_s3 }
  0x43   : > { %p2030_p6 = pnand %p2028_p1, %p2016_p7  ;;  %p2036_p10 = scmp.lt.s32.totalorder %s2034_s14, %s2027_s12 }
  0x45   : > { %p2031_p11 = pneg %p2030_p6  ;;  %p2037_p4 = por %p2036_p10, %p2035_p9 }
  0x47   : > { %p2038_p8 = pnand %p2037_p4, %p2031_p11 }
  0x49   : > { %2041 = shalt.err (!%p2038_p8)
}
  0x4a   : > { %s2926_s16 = smov 8   ;;  %s2927_s20 = smov 128  }
  0x4b   : > { %1828 = dma.hbm_to_vmem [thread:$0]  (!%p2267_p2), %s2263_s22, 2048, %s2265_s29, %s2271_s13, %s2927_s20, %s2927_s20, %s2926_s16  }
  0x4c   : > { %p2928_p1 = scmp.ne.s32.totalorder %s2921_s9, 0 }
  0x4e   : > { %282 = sbr.rel (%p2928_p1) target bundleno = 1196 (0x4ac), region = 48 }
  0x53   : > { %s2298_s17 = sand.u32 1, %s2102_s25   ;;  %p2929_p4 = scmp.ne.s32.totalorder %s2919_s30, 0 }
  0x54   : > { %s1647_s3 = sshll.u32 %s2298_s17, 7  ;;  %s285_s19 = scalar_lea.sflag [#allocation3], %s2298_s17 }
  0x55   : > { %s2304_s11 = scalar_lea.vmem [#allocation2], %s1647_s3 }
  0x56   : > { %2085 = dma.done.wait (%p2929_p4), %s285_s19, 2048  }
  0x57   : > { %2087 = vsyncadd (%p2929_p4), %s285_s19, 4294965248  ;;  %p2930_p6 = scmp.eq.s32.totalorder %s2186_s28, 0 }
  0x59   : > { %2089 = dma.done.wait (%p2930_p6), [#allocation6], 1536   ;;  %p2931_p8 = pmov %p2930_p6 }
  0x5a   : > { %v2119_v0 = vmov 0.0   ;;  %vm2120_vm0 = vmmov 0   ;;  %v1882_v1 = vld [vmem:[%s2883_s1 + $0x18] sm:$0xff]   ;;  %v1883_v2 = vld [vmem:[%s2883_s1 + $0x10] sm:$0xff]   ;;  %vm354_vm1 = vcmask 523264   ;;  %v1884_v3 = vld [vmem:[%s2883_s1 + $0x8] sm:$0xff]  }
  0x5b   : > { %2091 = vsyncadd (%p2931_p8), [#allocation6], 4294965760  ;;  %1740 = vmatprep.subr.bf16.mxu0 %v2119_v0  ;;  %1748 = vmatprep.mubr.msk.bf16.mxu0 %vm2120_vm0, %v2119_v0  ;;  %v2324_v4 = vld [vmem:[%s2304_s11] sm:$0xff]  ;;  %v2327_v5 = vld [vmem:[%s2304_s11 + $0x8] sm:$0xff]  ;;  %vm444_vm2 = vcmask 1041409   ;;  %vm449_vm3 = vcmask 1043459  }
  0x5c   : > { %1752 = vmatprep.subr.bf16.mxu1 %v2119_v0  ;;  %1754 = vmatprep.mubr.msk.bf16.mxu1 %vm2120_vm0, %v2119_v0  ;;  %v2330_v6 = vld [vmem:[%s2304_s11 + $0x10] sm:$0xff]  ;;  %v2333_v7 = vld [vmem:[%s2304_s11 + $0x18] sm:$0xff]  ;;  %v2336_v8 = vld [vmem:[%s2304_s11 + $0x20] sm:$0xff]  ;;  %v355_v10 = vsel %vm354_vm1, %v2324_v4, 0.0  ;;  %v356_v11 = vsel %vm354_vm1, %v2327_v5, 0.0  ;;  %v400_v41 = vsel %vm354_vm1, %v2324_v4, -inf }
  0x5d   : > { %1741 = vmatpush3.bf16.msra.mxu0 %v1882_v1  ;;  %v2339_v9 = vld [vmem:[%s2304_s11 + $0x28] sm:$0xff]  ;;  %v358_v12 = vsel %vm354_vm1, %v2330_v6, 0.0  ;;  %v2348_v13 = vld [vmem:[%s2304_s11 + $0x30] sm:$0xff]  ;;  %v2351_v14 = vld [vmem:[%s2304_s11 + $0x38] sm:$0xff]  ;;  %v357_v16 = vadd.f32 %v356_v11, %v355_v10  ;;  %v360_v17 = vsel %vm354_vm1, %v2333_v7, 0.0  ;;  %v362_v18 = vsel %vm354_vm1, %v2336_v8, 0.0 }
  0x5e   : > { %1742 = vmatprep.subr.bf16.mxu0 %v2119_v0  ;;  %v2354_v15 = vld [vmem:[%s2304_s11 + $0x40] sm:$0xff]  ;;  %v364_v19 = vsel %vm354_vm1, %v2339_v9, 0.0  ;;  %v2363_v20 = vld [vmem:[%s2304_s11 + $0x48] sm:$0xff]  ;;  %v2366_v21 = vld [vmem:[%s2304_s11 + $0x50] sm:$0xff]  ;;  %v366_v23 = vsel %vm354_vm1, %v2348_v13, 0.0  ;;  %v368_v24 = vsel %vm354_vm1, %v2351_v14, 0.0 }
  0x5f   : > { %2932 = vst [vmem:[#allocation12_spill] sm:$0xff] %v2366_v21  ;;  %v2369_v22 = vld [vmem:[%s2304_s11 + $0x58] sm:$0xff]  ;;  %v376_v25 = vsel %vm354_vm1, %v2354_v15, 0.0  ;;  %v2378_v26 = vld [vmem:[%s2304_s11 + $0x60] sm:$0xff]  ;;  %v2381_v27 = vld [vmem:[%s2304_s11 + $0x68] sm:$0xff]  ;;  %v359_v29 = vadd.f32 %v358_v12, %v357_v16  ;;  %v377_v30 = vsel %vm354_vm1, %v2363_v20, 0.0 }
  0x60   : > { %2933 = vst [vmem:[#allocation13_spill] sm:$0xff] %v2369_v22  ;;  %2934 = vst [vmem:[#allocation14_spill] sm:$0xff] %v2378_v26  ;;  %v2384_v28 = vld [vmem:[%s2304_s11 + $0x70] sm:$0xff]  ;;  %v379_v31 = vsel %vm354_vm1, %v2366_v21, 0.0  ;;  %v381_v32 = vsel %vm354_vm1, %v2369_v22, 0.0  ;;  %v2393_v33 = vld [vmem:[%s2304_s11 + $0x78] sm:$0xff]  ;;  %v378_v34 = vadd.f32 %v377_v30, %v376_v25 }
  0x61   : > { %1743 = vmatpush3.bf16.msra.mxu0 %v1883_v2  ;;  %2935 = vst [vmem:[#allocation15_spill] sm:$0xff] %v2381_v27  ;;  %2936 = vst [vmem:[#allocation16_spill] sm:$0xff] %v2384_v28  ;;  %v383_v35 = vsel %vm354_vm1, %v2378_v26, 0.0  ;;  %v385_v36 = vsel %vm354_vm1, %v2381_v27, 0.0  ;;  %v387_v37 = vsel %vm354_vm1, %v2384_v28, 0.0  ;;  %v1885_v38 = vld [vmem:[%s2883_s1] sm:$0xff]   ;;  %v361_v39 = vadd.f32 %v360_v17, %v359_v29 }
  0x62   : > { %1744 = vmatprep.subr.bf16.mxu0 %v2119_v0  ;;  %2937 = vst [vmem:[#allocation17_spill] sm:$0xff] %v2393_v33  ;;  %v389_v40 = vsel %vm354_vm1, %v2393_v33, 0.0  ;;  %v401_v42 = vsel %vm354_vm1, %v2327_v5, -inf  ;;  %v380_v43 = vadd.f32 %v379_v31, %v378_v34  ;;  %v402_v44 = vsel %vm354_vm1, %v2330_v6, -inf  ;;  %s2783_s12 = scalar_lea.vmem [#allocation8], %s1647_s3  ;;  %s1708_s3 = sshll.u32 %s2186_s28, 11 }
  0x63   : > { %v404_v45 = vsel %vm354_vm1, %v2333_v7, -inf  ;;  %v406_v46 = vsel %vm354_vm1, %v2336_v8, -inf  ;;  %v363_v47 = vadd.f32 %v362_v18, %v361_v39  ;;  %v403_v48 = vmax.f32 %v400_v41, %v402_v44  ;;  %s1545_s14 = sshll.u32 %s2783_s12, 4  ;;  %s2832_s19 = scalar_lea.hbm %s2889_s7, %s1708_s3  ;;  %s2834_s14 = int_to_ptr.vmem [resolvable:$true] %s1545_s14 }
  0x64   : > { %v405_v49 = vmax.f32 %v401_v42, %v404_v45  ;;  %v408_v50 = vsel %vm354_vm1, %v2339_v9, -inf  ;;  %v382_v51 = vadd.f32 %v381_v32, %v380_v43  ;;  %v410_v52 = vsel %vm354_vm1, %v2348_v13, -inf  ;;  %s1531_s28 = scalar_lea.sflag [#allocation4], %s2298_s17  ;;  %s2042_s11 = scalar_lea.vmem %s2834_s14, 2048 }
  0x65   : > { %1745 = vmatpush3.bf16.msra.mxu0 %v1884_v3  ;;  %v412_v53 = vsel %vm354_vm1, %v2351_v14, -inf  ;;  %v421_v54 = vsel %vm354_vm1, %v2354_v15, -inf  ;;  %v365_v55 = vadd.f32 %v364_v19, %v363_v47  ;;  %v407_v56 = vmax.f32 %v403_v48, %v406_v46  ;;  %p2043_p10 = scmp.ne.s32.totalorder %s2834_s14, %s2042_s11  ;;  %p2976_p2 = scmp.ne.s32.totalorder %s2924_s18, 0 }
  0x66   : > { %1746 = vmatprep.subr.bf16.mxu0 %v2119_v0  ;;  %v409_v57 = vmax.f32 %v405_v49, %v408_v50  ;;  %v422_v58 = vsel %vm354_vm1, %v2363_v20, -inf  ;;  %v384_v59 = vadd.f32 %v383_v35, %v382_v51  ;;  %v423_v60 = vsel %vm354_vm1, %v2366_v21, -inf  ;;  %s2122_s30 = smov [#allocation8]  }
  0x67   : > { %v425_v61 = vsel %vm354_vm1, %v2369_v22, -inf  ;;  %v427_v62 = vsel %vm354_vm1, %v2378_v26, -inf  ;;  %v367_v63 = vadd.f32 %v366_v23, %v365_v55  ;;  %v411_v0 = vmax.f32 %v407_v56, %v410_v52  ;;  %p2044_p7 = pnand %p2043_p10, %p2976_p2  ;;  %s2046_s9 = sshll.u32 %s2122_s30, 4  ;;  %s2047_s9 = int_to_ptr.vmem [resolvable:$false] %s2046_s9 }
  0x68   : > { %v413_v1 = vmax.f32 %v409_v57, %v412_v53  ;;  %v424_v2 = vmax.f32 %v421_v54, %v423_v60  ;;  %v386_v3 = vadd.f32 %v385_v36, %v384_v59  ;;  %v426_v10 = vmax.f32 %v422_v58, %v425_v61  ;;  %s2048_s22 = scalar_lea.vmem %s2047_s9, 4096  ;;  %p2049_p13 = scmp.lt.s32.totalorder %s2834_s14, %s2047_s9 }
  0x69   : > { %1747 = vmatpush3.bf16.msra.mxu0 %v1885_v38  ;;  %v429_v11 = vsel %vm354_vm1, %v2381_v27, -inf  ;;  %v431_v12 = vsel %vm354_vm1, %v2384_v28, -inf  ;;  %v369_v16 = vadd.f32 %v368_v24, %v367_v63  ;;  %v433_v19 = vsel %vm354_vm1, %v2393_v33, -inf  ;;  %v532_v63 = vld [vmem:[%s2884_s2] sm:$0xf]  ;;  %p2045_p12 = pneg %p2044_p7  ;;  %p2050_p0 = scmp.lt.s32.totalorder %s2048_s22, %s2042_s11 }
  0x6a   : > { %v414_v17 = vmax.f32 %v411_v0, %v413_v1  ;;  %v428_v18 = vmax.f32 %v424_v2, %v427_v62  ;;  %v388_v25 = vadd.f32 %v387_v37, %v386_v3  ;;  %v430_v29 = vmax.f32 %v426_v10, %v429_v11 }
  0x6b   : > { %v370_v23 = vrot.slane %v369_v16, 4  ;;  %vm452_vm4 = vcmask 1041408   ;;  %vm537_vm5 = vcmask 1043456   ;;  %vm533_vm6 = vcmask 64512   ;;  %p2051_p5 = por %p2050_p0, %p2049_p13 }
  0x6c   : > { %v415_v30 = vrot.slane %v414_v17, 4  ;;  %v432_v31 = vmax.f32 %v428_v18, %v431_v12  ;;  %v390_v32 = vadd.f32 %v389_v40, %v388_v25  ;;  %v434_v34 = vmax.f32 %v430_v29, %v433_v19 }
  0x6d   : > { %v371_v35 = vadd.f32 %v370_v23, %v369_v16  ;;  %v539_v0 = vsel %vm537_vm5, %v532_v63, 0  ;;  %vm779_vm7 = vcmask 130112   ;;  %vm786_vm8 = vcmask 195712   ;;  %p2052_p3 = pnand %p2051_p5, %p2045_p12 }
  0x6e   : > { %v416_v36 = vmax.f32 %v414_v17, %v415_v30  ;;  %v391_v38 = vrot.slane %v390_v32, 4  ;;  %v435_v39 = vmax.f32 %v432_v31, %v434_v34  ;;  %1753 = vmatpush3.bf16.msra.mxu1 %v539_v0  ;;  %vm793_vm9 = vcmask 261312  }
  0x6f   : > { %v372_v41 = vrot.slane %v371_v35, 2  ;;  %vm890_vm10 = vcmask 654912   ;;  %vm800_vm11 = vcmask 326912   ;;  %vm897_vm12 = vcmask 720512  }
  0x70   : > { %v417_v42 = vrot.slane %v416_v36, 2  ;;  %v392_v43 = vadd.f32 %v391_v38, %v390_v32  ;;  %v436_v24 = vrot.slane %v435_v39, 4  ;;  %v2121_v32 = vmov 1966171168  }
  0x71   : > { %v373_v44 = vadd.f32 %v372_v41, %v371_v35  ;;  %v593_v34 = vunpack.c.l.s4 %v2121_v32  ;;  %v595_v35 = vlaneseq  ;;  %vm904_vm13 = vcmask 786112  }
  0x72   : > { %v418_v45 = vmax.f32 %v416_v36, %v417_v42  ;;  %v393_v46 = vrot.slane %v392_v43, 2  ;;  %v437_v47 = vmax.f32 %v435_v39, %v436_v24  ;;  %vm807_vm14 = vcmask 392512  }
  0x73   : > { %v374_v48 = vrot.slane %v373_v44, 1  ;;  %v594_v36 = vunpack.c.0.s8 %v593_v34  ;;  %v2444_v38 = vshrl.u32 %v595_v35, 7  ;;  %vm911_vm15 = vcmask 851712  }
  0x74   : > { %v394_v37 = vadd.f32 %v393_v46, %v392_v43  ;;  %v419_v49 = vrot.slane %v418_v45, 1  ;;  %v438_v50 = vrot.slane %v437_v47, 2  ;;  %vm918_vm0 = vcmask 917312  }
  0x75   : > { %v375_v51 = vadd.f32 %v374_v48, %v373_v44  ;;  %v2447_v39 = vsub.s32 %v594_v36, %v2444_v38  ;;  %v2451_v43 = vsub.s32 0, %v2444_v38  ;;  %vm821_vm5 = vcmask 523712  }
  0x76   : > { %v395_v52 = vrot.slane %v394_v37, 1  ;;  %v439_v40 = vmax.f32 %v437_v47, %v438_v50  ;;  %v420_v55 = vmax.f32 %v418_v45, %v419_v49 }
  0x77   : > { %v398_v54 = vmul.f32 0.015625, %v375_v51 }
  0x78   : > { %v396_v53 = vadd.f32 %v395_v52, %v394_v37  ;;  %v440_v56 = vrot.slane %v439_v40, 1 }
  0x7a   : > { %v399_v57 = vmul.f32 0.015625, %v396_v53  ;;  %v441_v58 = vmax.f32 %v439_v40, %v440_v56 }
  0x7c   : > { %v445_v59 = vsel %vm444_vm2, %v399_v57, %v398_v54  ;;  %v450_v60 = vsel %vm449_vm3, %v441_v58, %v420_v55  ;;  %vm814_vm3 = vcmask 458112  }
  0x7d   : > { %v453_v61 = vsel %vm452_vm4, %v445_v59, %v450_v60  ;;  %vm925_vm4 = vcmask 982912  }
  0x7e   : > { %v454_v62 = vpack.c.bf16 %v453_v61, %v453_v61 }
  0x80   : > { %1749 = vmatmul.mubr.msk.bf16.vlgmr.msra.gmra.mxu0 %vm354_vm1, %v454_v62 }
 0x140   : > { %v524_v1 = vpop.f32.mrf.mxu0 }
 0x141   : > { %v530_v2 = vmax.f32 %v524_v1, 0.0 }
 0x142   : > { %v1750_v3 = vpop.f32.mrf.mxu0 }
 0x143   : > { %v531_v10 = vpack.c.bf16 %v530_v2, %v530_v2 }
 0x144   : > { %v527_v11 = vpop.f32.mrf.mxu0 }
 0x145   : > { %1755 = vmatmul.mubr.msk.bf16.vlgmr.msra.gmra.mxu1 %vm533_vm6, %v531_v10  ;;  %vm932_vm6 = vcmask 1048512  }
 0x146   : > { %v1751_v12 = vpop.f32.mrf.mxu0 }
 0x205   : > { %v575_v16 = vpop.f32.mrf.mxu1 }
 0x206   : > { %v582_v17 = vrot.slane %v575_v16, 2 }
 0x207   : > { %v1756_v18 = vpop.f32.mrf.mxu1 }
 0x208   : > { %v584_v19 = vadd.f32 %v582_v17, %v575_v16 }
 0x209   : > { %v578_v25 = vpop.f32.mrf.mxu1 }
 0x20a   : > { %v1657_v29 = vmul.f32 -1.442695, %v584_v19 }
 0x20b   : > { %v1757_v23 = vpop.f32.mrf.mxu1 }
 0x20c   : > { %1894 = vpow2.f32 %v1657_v29 }
 0x219   : > { %v1895_v30 = vpop.eup %1894 }
 0x21a   : > { %v588_v31 = vadd.f32 1.0, %v1895_v30 }
 0x21c   : > { %1896 = vrcp.f32 %v588_v31 }
 0x229   : > { %v1897_v41 = vpop.eup %1896 }
 0x22a   : > { %v598_v42 = vrot.slane %v1897_v41, %v2447_v39 }
 0x22c   : > { %v599_v24 = vcombine.high %v598_v42, %v598_v42  ;;  %v606_v44 = vrot.slane %v598_v42, %v2447_v39 }
 0x22e   : > { %v613_v45 = vrot.slane %v599_v24, %v2447_v39  ;;  %v617_v46 = vrot.slane %v606_v44, %v2451_v43 }
 0x230   : > { %v621_v47 = vrot.slane %v613_v45, %v2451_v43  ;;  %v2458_v48 = vmul.f32 %v617_v46, %v2327_v5  ;;  %v2461_v37 = vmul.f32 %v617_v46, %v2324_v4  ;;  %v2475_v53 = vmul.f32 %v617_v46, %v2330_v6 }
 0x231   : > { %v2485_v57 = vmul.f32 %v617_v46, %v2333_v7  ;;  %v2502_v0 = vmul.f32 %v617_v46, %v2336_v8  ;;  %v2516_v12 = vmul.f32 %v617_v46, %v2339_v9  ;;  %v2530_v29 = vmul.f32 %v617_v46, %v2348_v13 }
 0x232   : > { %2938 = vst [vmem:[#allocation18_spill] sm:$0xff] %v2458_v48  ;;  %2939 = vst [vmem:[#allocation19_spill] sm:$0xff] %v2461_v37  ;;  %v707_v49 = vsel %vm354_vm1, %v2458_v48, -inf  ;;  %v640_v50 = vsel %vm354_vm1, %v2461_v37, 0.0  ;;  %v2468_v51 = vmul.f32 %v621_v47, %v2354_v15  ;;  %v643_v52 = vsel %vm354_vm1, %v2458_v48, 0.0 }
 0x233   : > { %708 = vmax.xlane.f32.xlu1 %v707_v49  ;;  %641 = vadd.xlane.f32.xlu0 %v640_v50  ;;  %2941 = vst [vmem:[#allocation21_spill] sm:$0xff] %v2475_v53  ;;  %v2478_v54 = vmul.f32 %v621_v47, %v2363_v20  ;;  %v646_v55 = vsel %vm354_vm1, %v2475_v53, 0.0  ;;  %2943 = vst [vmem:[#allocation23_spill] sm:$0xff] %v2485_v57  ;;  %v2488_v58 = vmul.f32 %v621_v47, %v2366_v21 }
 0x234   : > { %2940 = vst [vmem:[#allocation20_spill] sm:$0xff] %v2468_v51  ;;  %v664_v40 = vsel %vm354_vm1, %v2468_v51, 0.0  ;;  %v649_v59 = vsel %vm354_vm1, %v2485_v57, 0.0  ;;  %v2495_v61 = vmul.f32 %v621_v47, %v2369_v22  ;;  %v704_v62 = vsel %vm354_vm1, %v2461_v37, -inf  ;;  %2946 = vst [vmem:[#allocation26_spill] sm:$0xff] %v2502_v0 }
 0x235   : > { %2942 = vst [vmem:[#allocation22_spill] sm:$0xff] %v2478_v54  ;;  %v667_v56 = vsel %vm354_vm1, %v2478_v54, 0.0  ;;  %2944 = vst [vmem:[#allocation24_spill] sm:$0xff] %v2488_v58  ;;  %v670_v60 = vsel %vm354_vm1, %v2488_v58, 0.0  ;;  %v652_v1 = vsel %vm354_vm1, %v2502_v0, 0.0  ;;  %v731_v2 = vsel %vm354_vm1, %v2478_v54, -inf }
 0x236   : > { %2945 = vst [vmem:[#allocation25_spill] sm:$0xff] %v2495_v61  ;;  %v673_v63 = vsel %vm354_vm1, %v2495_v61, 0.0  ;;  %v2509_v3 = vmul.f32 %v621_v47, %v2378_v26  ;;  %v710_v10 = vsel %vm354_vm1, %v2475_v53, -inf  ;;  %2948 = vst [vmem:[#allocation28_spill] sm:$0xff] %v2516_v12  ;;  %v655_v16 = vsel %vm354_vm1, %v2516_v12, 0.0 }
 0x237   : > { %644 = vadd.xlane.f32.xlu0 %v643_v52  ;;  %665 = vadd.xlane.f32.xlu1 %v664_v40  ;;  %v734_v17 = vsel %vm354_vm1, %v2488_v58, -inf  ;;  %v2523_v18 = vmul.f32 %v621_v47, %v2381_v27  ;;  %v713_v19 = vsel %vm354_vm1, %v2485_v57, -inf  ;;  %2950 = vst [vmem:[#allocation30_spill] sm:$0xff] %v2530_v29  ;;  %v658_v23 = vsel %vm354_vm1, %v2530_v29, 0.0 }
 0x238   : > { %2947 = vst [vmem:[#allocation27_spill] sm:$0xff] %v2509_v3  ;;  %v676_v11 = vsel %vm354_vm1, %v2509_v3, 0.0  ;;  %v737_v30 = vsel %vm354_vm1, %v2495_v61, -inf  ;;  %v2537_v31 = vmul.f32 %v621_v47, %v2384_v28  ;;  %v716_v32 = vsel %vm354_vm1, %v2502_v0, -inf }
 0x239   : > { %2949 = vst [vmem:[#allocation29_spill] sm:$0xff] %v2523_v18  ;;  %v679_v25 = vsel %vm354_vm1, %v2523_v18, 0.0  ;;  %v2544_v36 = vmul.f32 %v617_v46, %v2351_v14  ;;  %v740_v42 = vsel %vm354_vm1, %v2509_v3, -inf  ;;  %v2551_v24 = vmul.f32 %v621_v47, %v2393_v33 }
 0x23a   : > { %2951 = vst [vmem:[#allocation31_spill] sm:$0xff] %v2537_v31  ;;  %v682_v34 = vsel %vm354_vm1, %v2537_v31, 0.0  ;;  %v719_v44 = vsel %vm354_vm1, %v2516_v12, -inf  ;;  %v728_v46 = vsel %vm354_vm1, %v2468_v51, -inf  ;;  %v743_v49 = vsel %vm354_vm1, %v2523_v18, -inf }
 0x23b   : > { %647 = vadd.xlane.f32.xlu0 %v646_v55  ;;  %668 = vadd.xlane.f32.xlu1 %v667_v56  ;;  %2952 = vst [vmem:[#allocation32_spill] sm:$0xff] %v2544_v36  ;;  %v661_v41 = vsel %vm354_vm1, %v2544_v36, 0.0  ;;  %2953 = vst [vmem:[#allocation33_spill] sm:$0xff] %v2551_v24  ;;  %v685_v45 = vsel %vm354_vm1, %v2551_v24, 0.0  ;;  %v722_v47 = vsel %vm354_vm1, %v2530_v29, -inf  ;;  %v746_v50 = vsel %vm354_vm1, %v2537_v31, -inf }
 0x23c   : > { %v725_v52 = vsel %vm354_vm1, %v2544_v36, -inf  ;;  %v749_v40 = vsel %vm354_vm1, %v2551_v24, -inf }
 0x23f   : > { %650 = vadd.xlane.f32.xlu0 %v649_v59  ;;  %671 = vadd.xlane.f32.xlu1 %v670_v60 }
 0x243   : > { %705 = vmax.xlane.f32.xlu0 %v704_v62  ;;  %674 = vadd.xlane.f32.xlu1 %v673_v63 }
 0x247   : > { %653 = vadd.xlane.f32.xlu0 %v652_v1  ;;  %732 = vmax.xlane.f32.xlu1 %v731_v2 }
 0x24b   : > { %711 = vmax.xlane.f32.xlu0 %v710_v10  ;;  %677 = vadd.xlane.f32.xlu1 %v676_v11 }
 0x24f   : > { %656 = vadd.xlane.f32.xlu0 %v655_v16  ;;  %735 = vmax.xlane.f32.xlu1 %v734_v17 }
 0x253   : > { %714 = vmax.xlane.f32.xlu0 %v713_v19  ;;  %680 = vadd.xlane.f32.xlu1 %v679_v25 }
 0x257   : > { %659 = vadd.xlane.f32.xlu0 %v658_v23  ;;  %738 = vmax.xlane.f32.xlu1 %v737_v30 }
 0x25b   : > { %717 = vmax.xlane.f32.xlu0 %v716_v32  ;;  %683 = vadd.xlane.f32.xlu1 %v682_v34  ;;  %v769_v32 = vand.u32 127, %v595_v35 }
 0x25d   : > { %v802_v24 = vadd.s32 4294967256, %v769_v32  ;;  %v2594_v35 = vsub.s32 %v769_v32, %v2444_v38  ;;  %v899_v18 = vadd.s32 4294967208, %v769_v32  ;;  %v809_v51 = vadd.s32 4294967248, %v769_v32 }
 0x25e   : > { %v906_v0 = vadd.s32 4294967200, %v769_v32  ;;  %v816_v12 = vadd.s32 4294967240, %v769_v32  ;;  %v920_v22 = vadd.s32 4294967184, %v769_v32 }
 0x25f   : > { %662 = vadd.xlane.f32.xlu0 %v661_v41  ;;  %741 = vmax.xlane.f32.xlu1 %v740_v42  ;;  %v885_v42 = vadd.s32 4294967224, %v769_v32  ;;  %v2618_v57 = vsub.s32 %v899_v18, %v2444_v38  ;;  %v2621_v33 = vsub.s32 %v809_v51, %v2444_v38 }
 0x260   : > { %v2626_v21 = vsub.s32 %v906_v0, %v2444_v38  ;;  %v2629_v18 = vsub.s32 %v816_v12, %v2444_v38 }
 0x261   : > { %v2591_v31 = vsub.s32 %v885_v42, %v2444_v38 }
 0x263   : > { %720 = vmax.xlane.f32.xlu0 %v719_v44  ;;  %686 = vadd.xlane.f32.xlu1 %v685_v45  ;;  %v774_v44 = vadd.s32 4294967288, %v769_v32  ;;  %v781_v45 = vadd.s32 4294967280, %v769_v32 }
 0x265   : > { %v777_v3 = vsub.s32 %v774_v44, %v2444_v38  ;;  %v2598_v58 = vsub.s32 %v781_v45, %v2444_v38 }
 0x267   : > { %729 = vmax.xlane.f32.xlu0 %v728_v46  ;;  %744 = vmax.xlane.f32.xlu1 %v743_v49  ;;  %v788_v46 = vadd.s32 4294967272, %v769_v32  ;;  %v880_v49 = vadd.s32 4294967232, %v769_v32 }
 0x269   : > { %v2601_v61 = vsub.s32 %v788_v46, %v2444_v38  ;;  %v2604_v42 = vsub.s32 %v880_v49, %v2444_v38  ;;  %v2615_v46 = vsub.s32 %v802_v24, %v2444_v38 }
 0x26b   : > { %723 = vmax.xlane.f32.xlu0 %v722_v47  ;;  %747 = vmax.xlane.f32.xlu1 %v746_v50  ;;  %v795_v47 = vadd.s32 4294967264, %v769_v32  ;;  %v892_v50 = vadd.s32 4294967216, %v769_v32 }
 0x26d   : > { %v2607_v54 = vsub.s32 %v795_v47, %v2444_v38  ;;  %v2610_v44 = vsub.s32 %v892_v50, %v2444_v38  ;;  %v913_v47 = vadd.s32 4294967192, %v769_v32 }
 0x26f   : > { %726 = vmax.xlane.f32.xlu0 %v725_v52  ;;  %750 = vmax.xlane.f32.xlu1 %v749_v40  ;;  %v2633_v51 = vsub.s32 %v913_v47, %v2444_v38 }
 0x2bc   : > { %v2569_v55 = vpop.xlane.xlu1 %708  ;;  %v642_v56 = vpop.xlane.xlu0 %641 }
 0x2bd   : > { %v688_v37 = vmul.f32 0.015625, %v642_v56 }
 0x2c0   : > { %v645_v59 = vpop.xlane.xlu0 %644  ;;  %v666_v60 = vpop.xlane.xlu1 %665 }
 0x2c1   : > { %v689_v36 = vmul.f32 0.015625, %v645_v59  ;;  %v696_v59 = vmul.f32 0.015625, %v666_v60  ;;  %v927_v60 = vadd.s32 4294967176, %v769_v32  ;;  %v2646_v32 = vsub.s32 %v920_v22, %v2444_v38 }
 0x2c3   : > { %v930_v22 = vsub.s32 %v927_v60, %v2444_v38 }
 0x2c4   : > { %v648_v62 = vpop.xlane.xlu0 %647  ;;  %v669_v63 = vpop.xlane.xlu1 %668 }
 0x2c5   : > { %v690_v53 = vmul.f32 0.015625, %v648_v62  ;;  %v697_v49 = vmul.f32 0.015625, %v669_v63  ;;  %v778_v62 = vrot.slane %v689_v36, %v777_v3 }
 0x2c7   : > { %v785_v56 = vrot.slane %v690_v53, %v2598_v58 }
 0x2c8   : > { %v651_v1 = vpop.xlane.xlu0 %650  ;;  %v672_v2 = vpop.xlane.xlu1 %671 }
 0x2c9   : > { %v691_v50 = vmul.f32 0.015625, %v651_v1  ;;  %v698_v48 = vmul.f32 0.015625, %v672_v2  ;;  %v830_v1 = vrot.slane %v697_v49, %v777_v3  ;;  %v773_v2 = vrot.slane %v688_v37, %v2594_v35 }
 0x2ca   : > { %v889_v37 = vrot.slane %v2569_v55, %v2591_v31 }
 0x2cb   : > { %v835_v36 = vrot.slane %v698_v48, %v2598_v58  ;;  %v780_v48 = vsel %vm779_vm7, %v778_v62, %v773_v2 }
 0x2cc   : > { %v2571_v10 = vpop.xlane.xlu0 %705  ;;  %v675_v11 = vpop.xlane.xlu1 %674 }
 0x2cd   : > { %v699_v28 = vmul.f32 0.015625, %v675_v11  ;;  %v792_v11 = vrot.slane %v691_v50, %v2601_v61  ;;  %v884_v0 = vrot.slane %v2571_v10, %v2604_v42 }
 0x2cf   : > { %v840_v12 = vrot.slane %v699_v28, %v2601_v61  ;;  %v891_v49 = vsel %vm890_vm10, %v889_v37, %v884_v0 }
 0x2d0   : > { %v654_v16 = vpop.xlane.xlu0 %653  ;;  %v2573_v17 = vpop.xlane.xlu1 %732 }
 0x2d1   : > { %v692_v27 = vmul.f32 0.015625, %v654_v16  ;;  %v826_v16 = vrot.slane %v696_v59, %v2594_v35 }
 0x2d3   : > { %v799_v53 = vrot.slane %v692_v27, %v2607_v54  ;;  %v787_v27 = vsel %vm786_vm8, %v785_v56, %v780_v48  ;;  %v831_v28 = vsel %vm779_vm7, %v830_v1, %v826_v16 }
 0x2d4   : > { %v2575_v19 = vpop.xlane.xlu0 %711  ;;  %v678_v25 = vpop.xlane.xlu1 %677  ;;  %v794_v55 = vsel %vm793_vm9, %v792_v11, %v787_v27  ;;  %v836_v35 = vsel %vm786_vm8, %v835_v36, %v831_v28 }
 0x2d5   : > { %v700_v63 = vmul.f32 0.015625, %v678_v25  ;;  %v896_v58 = vrot.slane %v2575_v19, %v2610_v44  ;;  %v801_v47 = vsel %vm800_vm11, %v799_v53, %v794_v55 }
 0x2d7   : > { %v845_v10 = vrot.slane %v700_v63, %v2607_v54  ;;  %v841_v54 = vsel %vm793_vm9, %v840_v12, %v836_v35  ;;  %v898_v62 = vsel %vm897_vm12, %v896_v58, %v891_v49 }
 0x2d8   : > { %v2577_v23 = vpop.xlane.xlu0 %656  ;;  %v2579_v30 = vpop.xlane.xlu1 %735 }
 0x2d9   : > { %v693_v61 = vmul.f32 0.015625, %v2577_v23  ;;  %v941_v23 = vrot.slane %v2573_v17, %v2591_v31  ;;  %v846_v63 = vsel %vm800_vm11, %v845_v10, %v841_v54  ;;  %v946_v60 = vrot.slane %v2579_v30, %v2610_v44 }
 0x2db   : > { %v806_v1 = vrot.slane %v693_v61, %v2615_v46 }
 0x2dc   : > { %v2582_v34 = vpop.xlane.xlu0 %714  ;;  %v2584_v41 = vpop.xlane.xlu1 %680 }
 0x2dd   : > { %v701_v19 = vmul.f32 0.015625, %v2584_v41  ;;  %v903_v2 = vrot.slane %v2582_v34, %v2618_v57  ;;  %v808_v37 = vsel %vm807_vm14, %v806_v1, %v801_v47  ;;  %v978_v1 = vld [vmem:[#allocation5 + $0x10] sm:$0xff] }
 0x2df   : > { %v850_v17 = vrot.slane %v701_v19, %v2615_v46 }
 0x2e0   : > { %v2586_v52 = vpop.xlane.xlu0 %659  ;;  %v2588_v40 = vpop.xlane.xlu1 %738 }
 0x2e1   : > { %v694_v31 = vmul.f32 0.015625, %v2586_v52  ;;  %v851_v53 = vsel %vm807_vm14, %v850_v17, %v846_v63  ;;  %v981_v17 = vld [vmem:[#allocation5 + $0x28] sm:$0xff] }
 0x2e4   : > { %v2612_v29 = vpop.xlane.xlu0 %717  ;;  %v684_v45 = vpop.xlane.xlu1 %683 }
 0x2e5   : > { %v702_v50 = vmul.f32 0.015625, %v684_v45  ;;  %v951_v45 = vrot.slane %v2588_v40, %v2618_v57 }
 0x2e7   : > { %v855_v0 = vrot.slane %v702_v50, %v2621_v33 }
 0x2e8   : > { %v663_v24 = vpop.xlane.xlu0 %662  ;;  %v2623_v26 = vpop.xlane.xlu1 %741 }
 0x2e9   : > { %v695_v11 = vmul.f32 0.015625, %v663_v24  ;;  %v956_v30 = vrot.slane %v2623_v26, %v2626_v21  ;;  %v905_v26 = vsel %vm904_vm13, %v903_v2, %v898_v62 }
 0x2ec   : > { %v2643_v3 = vpop.xlane.xlu0 %720  ;;  %v687_v25 = vpop.xlane.xlu1 %686 }
 0x2ed   : > { %v703_v56 = vmul.f32 0.015625, %v687_v25  ;;  %v917_v46 = vrot.slane %v2643_v3, %v2633_v51  ;;  %v820_v3 = vrot.slane %v695_v11, %v2629_v18 }
 0x2ef   : > { %v860_v57 = vrot.slane %v703_v56, %v2629_v18 }
 0x2f0   : > { %v730_v38 = vpop.xlane.xlu0 %729  ;;  %v745_v59 = vpop.xlane.xlu1 %744 }
 0x2f1   : > { %v937_v41 = vrot.slane %v730_v38, %v2604_v42  ;;  %v910_v42 = vrot.slane %v2612_v29, %v2626_v21  ;;  %v961_v24 = vrot.slane %v745_v59, %v2633_v51  ;;  %v813_v29 = vrot.slane %v694_v31, %v2621_v33  ;;  %v977_v38 = vld [vmem:[#allocation5 + $0x8] sm:$0xff]  ;;  %v976_v59 = vld [vmem:[#allocation5] sm:$0xff] }
 0x2f2   : > { %v856_v33 = vsel %vm814_vm3, %v855_v0, %v851_v53  ;;  %v983_v0 = vld [vmem:[#allocation5 + $0x38] sm:$0xff]  ;;  %v1889_v53 = vld [vmem:[#allocation7 + $0x8] sm:$0xff]  }
 0x2f3   : > { %v942_v36 = vsel %vm890_vm10, %v941_v23, %v937_v41  ;;  %v912_v51 = vsel %vm911_vm15, %v910_v42, %v905_v26  ;;  %v815_v61 = vsel %vm814_vm3, %v813_v29, %v808_v37  ;;  %v979_v41 = vld [vmem:[#allocation5 + $0x18] sm:$0xff]  ;;  %v1892_v37 = vld [vmem:[%s2886_s4 + $0x8] sm:$0xff]  }
 0x2f4   : > { %v947_v34 = vsel %vm897_vm12, %v946_v60, %v942_v36  ;;  %v724_v44 = vpop.xlane.xlu0 %723  ;;  %v748_v52 = vpop.xlane.xlu1 %747  ;;  %v919_v10 = vsel %vm918_vm0, %v917_v46, %v912_v51  ;;  %v822_v35 = vsel %vm821_vm5, %v820_v3, %v815_v61  ;;  %v1888_v26 = vld [vmem:[%s2886_s4 + $0x18] sm:$0xff]   ;;  %v1890_v3 = vld [vmem:[%s2886_s4 + $0x10] sm:$0xff]   ;;  %v346_v51 = vpack.c.bf16 %v2327_v5, %v2324_v4 }
 0x2f5   : > { %v952_v40 = vsel %vm904_vm13, %v951_v45, %v947_v34  ;;  %v924_v12 = vrot.slane %v724_v44, %v2646_v32  ;;  %v966_v21 = vrot.slane %v748_v52, %v2646_v32  ;;  %v861_v32 = vsel %vm821_vm5, %v860_v57, %v856_v33  ;;  %v980_v45 = vld [vmem:[#allocation5 + $0x20] sm:$0xff]  ;;  %1782 = vmatprep.subr.bf16.mxu0 %v1888_v26 }
 0x2f6   : > { %v957_v16 = vsel %vm911_vm15, %v956_v30, %v952_v40  ;;  %v862_v54 = vsel %vm444_vm2, %v861_v32, %v822_v35  ;;  %v982_v30 = vld [vmem:[#allocation5 + $0x30] sm:$0xff]  ;;  %1783 = vmatpush3.bf16.msra.mxu0 %v1888_v26  ;;  %v347_v33 = vpack.c.bf16 %v2333_v7, %v2330_v6  ;;  %1766 = vmatprep.mubr.msk.bf16.mxu1 %vm354_vm1, %v346_v51  ;;  %v2954_v6 = vld [vmem:[#allocation12_spill] sm:$0xff]  ;;  %v2955_v7 = vld [vmem:[#allocation13_spill] sm:$0xff] }
 0x2f7   : > { %v962_v25 = vsel %vm918_vm0, %v961_v24, %v957_v16  ;;  %v926_v18 = vsel %vm925_vm4, %v924_v12, %v919_v10  ;;  %1784 = vmatprep.subr.bf16.mxu0 %v1890_v3  ;;  %v349_v4 = vpack.c.bf16 %v2351_v14, %v2348_v13  ;;  %v350_v5 = vpack.c.bf16 %v2363_v20, %v2354_v15  ;;  %v2956_v32 = vld [vmem:[#allocation14_spill] sm:$0xff]  ;;  %v2959_v13 = vld [vmem:[#allocation17_spill] sm:$0xff] }
 0x2f8   : > { %v727_v48 = vpop.xlane.xlu0 %726  ;;  %v751_v58 = vpop.xlane.xlu1 %750  ;;  %v967_v55 = vsel %vm925_vm4, %v966_v21, %v962_v25  ;;  %v1887_v21 = vld [vmem:[#allocation7 + $0x10] sm:$0xff]   ;;  %v1891_v25 = vld [vmem:[#allocation7] sm:$0xff]   ;;  %v351_v10 = vpack.c.bf16 %v2955_v7, %v2954_v6 }
 0x2f9   : > { %v931_v27 = vrot.slane %v727_v48, %v930_v22  ;;  %v971_v28 = vrot.slane %v751_v58, %v930_v22  ;;  %v1893_v48 = vld [vmem:[%s2886_s4] sm:$0xff]   ;;  %v348_v58 = vpack.c.bf16 %v2339_v9, %v2336_v8 }
 0x2fa   : > { %1785 = vmatpush3.bf16.msra.mxu0 %v1890_v3  ;;  %v2958_v9 = vld [vmem:[#allocation16_spill] sm:$0xff] }
 0x2fb   : > { %v933_v49 = vsel %vm932_vm6, %v931_v27, %v926_v18  ;;  %v972_v19 = vsel %vm932_vm6, %v971_v28, %v967_v55  ;;  %1786 = vmatprep.subr.bf16.mxu0 %v1892_v37  ;;  %v2957_v27 = vld [vmem:[#allocation15_spill] sm:$0xff]  ;;  %v353_v14 = vpack.c.bf16 %v2959_v13, %v2958_v9 }
 0x2fc   : > { %v973_v47 = vsel %vm444_vm2, %v972_v19, %v933_v49  ;;  %v352_v8 = vpack.c.bf16 %v2957_v27, %v2956_v32  ;;  %v2962_v9 = vld [vmem:[#allocation23_spill] sm:$0xff] }
 0x2fd   : > { %v975_v23 = vsel %vm354_vm1, %v862_v54, %v973_v47 }
 0x2fe   : > { %v991_v50 = vrot.slane %v975_v23, %v2447_v39  ;;  %1787 = vmatpush3.bf16.msra.mxu0 %v1892_v37 }
 0x2ff   : > { %1788 = vmatprep.subr.bf16.mxu0 %v1893_v48 }
 0x300   : > { %v999_v22 = vrot.slane %v991_v50, %v2447_v39  ;;  %v992_v60 = vcombine.high %v991_v50, %v991_v50 }
 0x302   : > { %v1010_v62 = vrot.slane %v999_v22, %v2451_v43  ;;  %v1006_v11 = vrot.slane %v992_v60, %v2447_v39  ;;  %1789 = vmatpush3.bf16.msra.mxu0 %v1893_v48 }
 0x304   : > { %v1018_v63 = vmul.f32 %v1010_v62, %v977_v38  ;;  %v1017_v56 = vmul.f32 %v1010_v62, %v976_v59  ;;  %v1020_v2 = vmul.f32 %v1010_v62, %v979_v41  ;;  %v1019_v31 = vmul.f32 %v1010_v62, %v978_v1 }
 0x305   : > { %v1022_v36 = vmul.f32 %v1010_v62, %v981_v17  ;;  %v1021_v42 = vmul.f32 %v1010_v62, %v980_v45  ;;  %v1014_v34 = vrot.slane %v1006_v11, %v2451_v43  ;;  %v1024_v44 = vmul.f32 %v1010_v62, %v983_v0  ;;  %v1886_v43 = vld [vmem:[#allocation7 + $0x18] sm:$0xff]  }
 0x306   : > { %1035 = vadd.xlane.f32.xlu1 %v1018_v63  ;;  %1033 = vadd.xlane.f32.xlu0 %v1017_v56  ;;  %v1023_v52 = vmul.f32 %v1010_v62, %v982_v30 }
 0x307   : > { %v1026_v46 = vmul.f32 %v1014_v34, %v977_v38  ;;  %v1025_v57 = vmul.f32 %v1014_v34, %v976_v59  ;;  %v1028_v40 = vmul.f32 %v1014_v34, %v979_v41  ;;  %v1027_v24 = vmul.f32 %v1014_v34, %v978_v1  ;;  %1758 = vmatprep.subr.bf16.mxu1 %v1886_v43 }
 0x308   : > { %v1030_v39 = vmul.f32 %v1014_v34, %v981_v17  ;;  %v1029_v29 = vmul.f32 %v1014_v34, %v980_v45  ;;  %v1032_v16 = vmul.f32 %v1014_v34, %v983_v0  ;;  %v1031_v12 = vmul.f32 %v1014_v34, %v982_v30  ;;  %1759 = vmatpush3.bf16.msra.mxu1 %v1886_v43 }
 0x309   : > { %1760 = vmatprep.subr.bf16.mxu1 %v1887_v21 }
 0x30a   : > { %1039 = vadd.xlane.f32.xlu1 %v1020_v2  ;;  %1037 = vadd.xlane.f32.xlu0 %v1019_v31 }
 0x30c   : > { %1761 = vmatpush3.bf16.msra.mxu1 %v1887_v21 }
 0x30d   : > { %1762 = vmatprep.subr.bf16.mxu1 %v1889_v53 }
 0x30e   : > { %1043 = vadd.xlane.f32.xlu1 %v1022_v36  ;;  %1041 = vadd.xlane.f32.xlu0 %v1021_v42 }
 0x310   : > { %1763 = vmatpush3.bf16.msra.mxu1 %v1889_v53 }
 0x311   : > { %1764 = vmatprep.subr.bf16.mxu1 %v1891_v25 }
 0x312   : > { %1047 = vadd.xlane.f32.xlu1 %v1024_v44  ;;  %1045 = vadd.xlane.f32.xlu0 %v1023_v52 }
 0x314   : > { %1765 = vmatpush3.bf16.msra.mxu1 %v1891_v25 }
 0x316   : > { %1051 = vadd.xlane.f32.xlu1 %v1026_v46  ;;  %1049 = vadd.xlane.f32.xlu0 %v1025_v57 }
 0x317   : > { %1767 = vmatmul.mubr.msk.bf16.vlgmr.msra.gmra.mxu1 %vm354_vm1, %v347_v33  ;;  %v2960_v33 = vld [vmem:[#allocation18_spill] sm:$0xff] }
 0x318   : > { %1770 = vmatprep.mubr.msk.bf16.mxu1 %vm354_vm1, %v348_v58 }
 0x31a   : > { %1055 = vadd.xlane.f32.xlu1 %v1028_v40  ;;  %1053 = vadd.xlane.f32.xlu0 %v1027_v24 }
 0x31e   : > { %1059 = vadd.xlane.f32.xlu1 %v1030_v39  ;;  %1057 = vadd.xlane.f32.xlu0 %v1029_v29 }
 0x31f   : > { %1771 = vmatmul.mubr.msk.bf16.gmra.mxu1 %vm354_vm1, %v349_v4  ;;  %v2961_v4 = vld [vmem:[#allocation19_spill] sm:$0xff] }
 0x320   : > { %1774 = vmatprep.mubr.msk.bf16.mxu1 %vm354_vm1, %v350_v5 }
 0x322   : > { %1063 = vadd.xlane.f32.xlu1 %v1032_v16  ;;  %1061 = vadd.xlane.f32.xlu0 %v1031_v12 }
 0x327   : > { %1775 = vmatmul.mubr.msk.bf16.gmra.mxu1 %vm354_vm1, %v351_v10 }
 0x328   : > { %1778 = vmatprep.mubr.msk.bf16.mxu1 %vm354_vm1, %v352_v8 }
 0x32f   : > { %1779 = vmatmul.mubr.msk.bf16.gmra.mxu1 %vm354_vm1, %v353_v14 }
 0x38f   : > { %v1036_v15 = vpop.xlane.xlu1 %1035  ;;  %v1034_v20 = vpop.xlane.xlu0 %1033 }
 0x390   : > { %v1659_v28 = vmul.f32 -1.442695, %v1036_v15  ;;  %v1658_v61 = vmul.f32 -1.442695, %v1034_v20  ;;  %v2963_v15 = vld [vmem:[#allocation21_spill] sm:$0xff] }
 0x392   : > { %1898 = vpow2.f32 %v1659_v28 }
 0x393   : > { %1900 = vpow2.f32 %v1658_v61  ;;  %v1040_v18 = vpop.xlane.xlu1 %1039  ;;  %v1038_v55 = vpop.xlane.xlu0 %1037 }
 0x394   : > { %v1661_v35 = vmul.f32 -1.442695, %v1040_v18  ;;  %v1660_v49 = vmul.f32 -1.442695, %v1038_v55 }
 0x396   : > { %1902 = vpow2.f32 %v1661_v35 }
 0x397   : > { %1904 = vpow2.f32 %v1660_v49  ;;  %v1044_v19 = vpop.xlane.xlu1 %1043  ;;  %v1042_v54 = vpop.xlane.xlu0 %1041 }
 0x398   : > { %v1663_v47 = vmul.f32 -1.442695, %v1044_v19  ;;  %v1662_v23 = vmul.f32 -1.442695, %v1042_v54  ;;  %v2964_v19 = vld [vmem:[#allocation28_spill] sm:$0xff] }
 0x39a   : > { %1906 = vpow2.f32 %v1663_v47 }
 0x39b   : > { %1908 = vpow2.f32 %v1662_v23  ;;  %v1048_v50 = vpop.xlane.xlu1 %1047  ;;  %v1046_v22 = vpop.xlane.xlu0 %1045  ;;  %v2965_v23 = vld [vmem:[#allocation26_spill] sm:$0xff] }
 0x39c   : > { %v1665_v38 = vmul.f32 -1.442695, %v1048_v50  ;;  %v1664_v59 = vmul.f32 -1.442695, %v1046_v22 }
 0x39e   : > { %1910 = vpow2.f32 %v1665_v38 }
 0x39f   : > { %v1899_v62 = vpop.eup %1898  ;;  %1912 = vpow2.f32 %v1664_v59  ;;  %v1052_v63 = vpop.xlane.xlu1 %1051 }
 0x3a0   : > { %v1050_v56 = vpop.xlane.xlu0 %1049  ;;  %v1901_v41 = vpop.eup %1900  ;;  %v1114_v1 = vadd.f32 1.0, %v1899_v62  ;;  %v1667_v60 = vmul.f32 -1.442695, %v1052_v63 }
 0x3a1   : > { %v1113_v2 = vadd.f32 1.0, %v1901_v41  ;;  %v1666_v31 = vmul.f32 -1.442695, %v1050_v56  ;;  %v2966_v41 = vld [vmem:[#allocation32_spill] sm:$0xff] }
 0x3a2   : > { %1914 = vrcp.f32 %v1114_v1 }
 0x3a3   : > { %v1903_v17 = vpop.eup %1902  ;;  %1916 = vrcp.f32 %v1113_v2  ;;  %v1056_v45 = vpop.xlane.xlu1 %1055  ;;  %v2967_v2 = vld [vmem:[#allocation30_spill] sm:$0xff] }
 0x3a4   : > { %v1054_v11 = vpop.xlane.xlu0 %1053  ;;  %v1905_v36 = vpop.eup %1904  ;;  %v1116_v42 = vadd.f32 1.0, %v1903_v17  ;;  %1918 = vpow2.f32 %v1667_v60  ;;  %v1669_v0 = vmul.f32 -1.442695, %v1056_v45 }
 0x3a5   : > { %v1115_v30 = vadd.f32 1.0, %v1905_v36  ;;  %1920 = vpow2.f32 %v1666_v31  ;;  %v1668_v34 = vmul.f32 -1.442695, %v1054_v11 }
 0x3a6   : > { %1922 = vrcp.f32 %v1116_v42 }
 0x3a7   : > { %v1907_v44 = vpop.eup %1906  ;;  %1924 = vrcp.f32 %v1115_v30  ;;  %v1060_v52 = vpop.xlane.xlu1 %1059  ;;  %v2968_v30 = vld [vmem:[#allocation22_spill] sm:$0xff] }
 0x3a8   : > { %v1058_v46 = vpop.xlane.xlu0 %1057  ;;  %v1909_v57 = vpop.eup %1908  ;;  %v1118_v40 = vadd.f32 1.0, %v1907_v44  ;;  %1926 = vpow2.f32 %v1669_v0  ;;  %v1671_v24 = vmul.f32 -1.442695, %v1060_v52  ;;  %v2969_v44 = vld [vmem:[#allocation20_spill] sm:$0xff] }
 0x3a9   : > { %v1117_v39 = vadd.f32 1.0, %v1909_v57  ;;  %1928 = vpow2.f32 %v1668_v34  ;;  %v1670_v29 = vmul.f32 -1.442695, %v1058_v46 }
 0x3aa   : > { %1930 = vrcp.f32 %v1118_v40 }
 0x3ab   : > { %v1911_v16 = vpop.eup %1910  ;;  %1932 = vrcp.f32 %v1117_v39  ;;  %v1064_v12 = vpop.xlane.xlu1 %1063 }
 0x3ac   : > { %v1062_v43 = vpop.xlane.xlu0 %1061  ;;  %v1913_v21 = vpop.eup %1912  ;;  %v1120_v26 = vadd.f32 1.0, %v1911_v16  ;;  %1934 = vpow2.f32 %v1671_v24  ;;  %v1673_v53 = vmul.f32 -1.442695, %v1064_v12  ;;  %v2970_v24 = vld [vmem:[#allocation25_spill] sm:$0xff] }
 0x3ad   : > { %v1119_v3 = vadd.f32 1.0, %v1913_v21  ;;  %1936 = vpow2.f32 %v1670_v29  ;;  %v1672_v25 = vmul.f32 -1.442695, %v1062_v43  ;;  %v2971_v29 = vld [vmem:[#allocation24_spill] sm:$0xff] }
 0x3ae   : > { %1938 = vrcp.f32 %v1120_v26  ;;  %v2972_v26 = vld [vmem:[#allocation29_spill] sm:$0xff] }
 0x3af   : > { %v1915_v37 = vpop.eup %1914  ;;  %1940 = vrcp.f32 %v1119_v3  ;;  %v2973_v3 = vld [vmem:[#allocation27_spill] sm:$0xff] }
 0x3b0   : > { %v1917_v51 = vpop.eup %1916  ;;  %1942 = vpow2.f32 %v1673_v53  ;;  %v1162_v48 = vmul.f32 %v1915_v37, %v2960_v33 }
 0x3b1   : > { %v1919_v58 = vpop.eup %1918  ;;  %1944 = vpow2.f32 %v1672_v25  ;;  %v1161_v5 = vmul.f32 %v1917_v51, %v2961_v4  ;;  %v2975_v4 = vld [vmem:[#allocation31_spill] sm:$0xff] }
 0x3b2   : > { %v1921_v6 = vpop.eup %1920  ;;  %v1122_v7 = vadd.f32 1.0, %v1919_v58 }
 0x3b3   : > { %v1923_v10 = vpop.eup %1922  ;;  %v1121_v32 = vadd.f32 1.0, %v1921_v6  ;;  %v1177_v27 = vpack.c.bf16 %v1162_v48, %v1161_v5  ;;  %v2974_v48 = vld [vmem:[#allocation33_spill] sm:$0xff] }
 0x3b4   : > { %v1925_v8 = vpop.eup %1924  ;;  %1946 = vrcp.f32 %v1122_v7  ;;  %v1164_v13 = vmul.f32 %v1923_v10, %v2962_v9 }
 0x3b5   : > { %v1927_v14 = vpop.eup %1926  ;;  %1948 = vrcp.f32 %v1121_v32  ;;  %1790 = vmatprep.mubr.msk.bf16.mxu0 %vm354_vm1, %v1177_v27  ;;  %v1163_v20 = vmul.f32 %v1925_v8, %v2963_v15  ;;  %v2778_v15 = vld [vmem:[%s2888_s6] ss:$0 sm:$0xff] }
 0x3b6   : > { %v1929_v28 = vpop.eup %1928  ;;  %v1124_v61 = vadd.f32 1.0, %v1927_v14 }
 0x3b7   : > { %v1931_v18 = vpop.eup %1930  ;;  %v1123_v55 = vadd.f32 1.0, %v1929_v28  ;;  %v1178_v35 = vpack.c.bf16 %v1164_v13, %v1163_v20 }
 0x3b8   : > { %v1933_v49 = vpop.eup %1932  ;;  %1950 = vrcp.f32 %v1124_v61  ;;  %v1166_v54 = vmul.f32 %v1931_v18, %v2964_v19 }
 0x3b9   : > { %v1935_v47 = vpop.eup %1934  ;;  %1952 = vrcp.f32 %v1123_v55  ;;  %1791 = vmatmul.mubr.msk.bf16.vlgmr.msra.gmra.mxu0 %vm354_vm1, %v1178_v35  ;;  %v1165_v50 = vmul.f32 %v1933_v49, %v2965_v23 }
 0x3ba   : > { %v1937_v22 = vpop.eup %1936  ;;  %v1126_v38 = vadd.f32 1.0, %v1935_v47 }
 0x3bb   : > { %v1939_v59 = vpop.eup %1938  ;;  %v1125_v62 = vadd.f32 1.0, %v1937_v22  ;;  %v1179_v63 = vpack.c.bf16 %v1166_v54, %v1165_v50 }
 0x3bc   : > { %v1941_v56 = vpop.eup %1940  ;;  %1954 = vrcp.f32 %v1126_v38  ;;  %v1168_v1 = vmul.f32 %v1939_v59, %v2966_v41 }
 0x3bd   : > { %v1943_v60 = vpop.eup %1942  ;;  %1956 = vrcp.f32 %v1125_v62  ;;  %1794 = vmatprep.mubr.msk.bf16.mxu0 %vm354_vm1, %v1179_v63  ;;  %v1167_v31 = vmul.f32 %v1941_v56, %v2967_v2 }
 0x3be   : > { %v1945_v17 = vpop.eup %1944  ;;  %v1128_v45 = vadd.f32 1.0, %v1943_v60 }
 0x3bf   : > { %v1127_v11 = vadd.f32 1.0, %v1945_v17  ;;  %v1180_v36 = vpack.c.bf16 %v1168_v1, %v1167_v31 }
 0x3c0   : > { %1958 = vrcp.f32 %v1128_v45 }
 0x3c1   : > { %v1947_v42 = vpop.eup %1946  ;;  %1960 = vrcp.f32 %v1127_v11  ;;  %1795 = vmatmul.mubr.msk.bf16.gmra.mxu0 %vm354_vm1, %v1180_v36 }
 0x3c2   : > { %v1949_v0 = vpop.eup %1948  ;;  %v1170_v34 = vmul.f32 %v1947_v42, %v2968_v30 }
 0x3c3   : > { %v1169_v52 = vmul.f32 %v1949_v0, %v2969_v44 }
 0x3c5   : > { %v1951_v46 = vpop.eup %1950  ;;  %v1181_v57 = vpack.c.bf16 %v1170_v34, %v1169_v52 }
 0x3c6   : > { %v1953_v40 = vpop.eup %1952  ;;  %v1172_v39 = vmul.f32 %v1951_v46, %v2970_v24 }
 0x3c7   : > { %1798 = vmatprep.mubr.msk.bf16.mxu0 %vm354_vm1, %v1181_v57  ;;  %v1171_v16 = vmul.f32 %v1953_v40, %v2971_v29 }
 0x3c9   : > { %v1955_v12 = vpop.eup %1954  ;;  %v1182_v43 = vpack.c.bf16 %v1172_v39, %v1171_v16 }
 0x3ca   : > { %v1957_v21 = vpop.eup %1956  ;;  %v1174_v53 = vmul.f32 %v1955_v12, %v2972_v26 }
 0x3cb   : > { %1799 = vmatmul.mubr.msk.bf16.gmra.mxu0 %vm354_vm1, %v1182_v43  ;;  %v1173_v25 = vmul.f32 %v1957_v21, %v2973_v3 }
 0x3cd   : > { %v1959_v37 = vpop.eup %1958  ;;  %v1183_v51 = vpack.c.bf16 %v1174_v53, %v1173_v25 }
 0x3ce   : > { %v1961_v33 = vpop.eup %1960  ;;  %v1176_v58 = vmul.f32 %v1959_v37, %v2974_v48 }
 0x3cf   : > { %1802 = vmatprep.mubr.msk.bf16.mxu0 %vm354_vm1, %v1183_v51  ;;  %v1175_v5 = vmul.f32 %v1961_v33, %v2975_v4 }
 0x3d1   : > { %v1184_v6 = vpack.c.bf16 %v1176_v58, %v1175_v5 }
 0x3d3   : > { %1803 = vmatmul.mubr.msk.bf16.gmra.mxu0 %vm354_vm1, %v1184_v6 }
 0x3d7   : > { %v1768_v7 = vpop.f32.mrf.mxu1 }
 0x3d9   : > { %v1283_v10 = vpop.f32.mrf.mxu1 }
 0x3db   : > { %v1769_v32 = vpop.f32.mrf.mxu1 }
 0x3dd   : > { %v1286_v27 = vpop.f32.mrf.mxu1 }
 0x3df   : > { %v1772_v8 = vpop.f32.mrf.mxu1 }
 0x3e1   : > { %v1299_v9 = vpop.f32.mrf.mxu1 }
 0x3e3   : > { %v1773_v13 = vpop.f32.mrf.mxu1 }
 0x3e5   : > { %v1302_v20 = vpop.f32.mrf.mxu1 }
 0x3e7   : > { %v1776_v49 = vpop.f32.mrf.mxu1 }
 0x3e9   : > { %v1315_v38 = vpop.f32.mrf.mxu1 }
 0x3eb   : > { %v1777_v60 = vpop.f32.mrf.mxu1 }
 0x3ed   : > { %v1318_v36 = vpop.f32.mrf.mxu1 }
 0x3ef   : > { %v1780_v34 = vpop.f32.mrf.mxu1 }
 0x3f1   : > { %v1331_v39 = vpop.f32.mrf.mxu1 }
 0x3f3   : > { %v1781_v53 = vpop.f32.mrf.mxu1 }
 0x3f5   : > { %v1334_v58 = vpop.f32.mrf.mxu1 }
 0x479   : > { %v1792_v14 = vpop.f32.mrf.mxu0 }
 0x47a   : > { %v1437_v28 = vadd.f32 %v1792_v14, %v1768_v7 }
 0x47b   : > { %v1428_v61 = vpop.f32.mrf.mxu0 }
 0x47c   : > { %v1500_v18 = vadd.f32 %v2778_v15, %v1437_v28  ;;  %v1429_v55 = vadd.f32 %v1428_v61, %v1283_v10 }
 0x47d   : > { %v1793_v35 = vpop.f32.mrf.mxu0 }
 0x47e   : > { %1516 = vst.msk [vmem:[%s2783_s12 + $0x10] sm:$0xff] %vm354_vm1, %v1500_v18  ;;  %v1498_v19 = vadd.f32 %v2778_v15, %v1429_v55  ;;  %v1440_v54 = vadd.f32 %v1793_v35, %v1769_v32 }
 0x47f   : > { %v1431_v47 = vpop.f32.mrf.mxu0 }
 0x480   : > { %1514 = vst.msk [vmem:[%s2783_s12] sm:$0xff] %vm354_vm1, %v1498_v19  ;;  %v1501_v23 = vadd.f32 %v2778_v15, %v1440_v54  ;;  %v1432_v50 = vadd.f32 %v1431_v47, %v1286_v27 }
 0x481   : > { %v1796_v22 = vpop.f32.mrf.mxu0 }
 0x482   : > { %1517 = vst.msk [vmem:[%s2783_s12 + $0x18] sm:$0xff] %vm354_vm1, %v1501_v23  ;;  %v1499_v59 = vadd.f32 %v2778_v15, %v1432_v50  ;;  %v1453_v62 = vadd.f32 %v1796_v22, %v1772_v8 }
 0x483   : > { %v1444_v63 = vpop.f32.mrf.mxu0 }
 0x484   : > { %1515 = vst.msk [vmem:[%s2783_s12 + $0x8] sm:$0xff] %vm354_vm1, %v1499_v59  ;;  %v1504_v56 = vadd.f32 %v2778_v15, %v1453_v62  ;;  %v1445_v41 = vadd.f32 %v1444_v63, %v1299_v9 }
 0x485   : > { %v1797_v1 = vpop.f32.mrf.mxu0 }
 0x486   : > { %1520 = vst.msk [vmem:[%s2783_s12 + $0x30] sm:$0xff] %vm354_vm1, %v1504_v56  ;;  %v1502_v2 = vadd.f32 %v2778_v15, %v1445_v41  ;;  %v1456_v31 = vadd.f32 %v1797_v1, %v1773_v13 }
 0x487   : > { %v1447_v17 = vpop.f32.mrf.mxu0 }
 0x488   : > { %1518 = vst.msk [vmem:[%s2783_s12 + $0x20] sm:$0xff] %vm354_vm1, %v1502_v2  ;;  %v1505_v45 = vadd.f32 %v2778_v15, %v1456_v31  ;;  %v1448_v11 = vadd.f32 %v1447_v17, %v1302_v20 }
 0x48a   : > { %1521 = vst.msk [vmem:[%s2783_s12 + $0x38] sm:$0xff] %vm354_vm1, %v1505_v45  ;;  %v1503_v42 = vadd.f32 %v2778_v15, %v1448_v11 }
 0x48b   : > { %v1800_v0 = vpop.f32.mrf.mxu0 }
 0x48c   : > { %1519 = vst.msk [vmem:[%s2783_s12 + $0x28] sm:$0xff] %vm354_vm1, %v1503_v42  ;;  %v1469_v30 = vadd.f32 %v1800_v0, %v1776_v49 }
 0x48d   : > { %v1460_v44 = vpop.f32.mrf.mxu0 }
 0x48e   : > { %v1508_v52 = vadd.f32 %v2778_v15, %v1469_v30  ;;  %v1461_v46 = vadd.f32 %v1460_v44, %v1315_v38 }
 0x48f   : > { %v1801_v57 = vpop.f32.mrf.mxu0 }
 0x490   : > { %1524 = vst.msk [vmem:[%s2783_s12 + $0x50] sm:$0xff] %vm354_vm1, %v1508_v52  ;;  %v1506_v40 = vadd.f32 %v2778_v15, %v1461_v46  ;;  %v1472_v24 = vadd.f32 %v1801_v57, %v1777_v60 }
 0x491   : > { %v1463_v29 = vpop.f32.mrf.mxu0 }
 0x492   : > { %1522 = vst.msk [vmem:[%s2783_s12 + $0x40] sm:$0xff] %vm354_vm1, %v1506_v40  ;;  %v1509_v16 = vadd.f32 %v2778_v15, %v1472_v24  ;;  %v1464_v12 = vadd.f32 %v1463_v29, %v1318_v36 }
 0x493   : > { %v1804_v43 = vpop.f32.mrf.mxu0 }
 0x494   : > { %1525 = vst.msk [vmem:[%s2783_s12 + $0x58] sm:$0xff] %vm354_vm1, %v1509_v16  ;;  %v1507_v21 = vadd.f32 %v2778_v15, %v1464_v12  ;;  %v1485_v26 = vadd.f32 %v1804_v43, %v1780_v34 }
 0x495   : > { %v1476_v3 = vpop.f32.mrf.mxu0 }
 0x496   : > { %1523 = vst.msk [vmem:[%s2783_s12 + $0x48] sm:$0xff] %vm354_vm1, %v1507_v21  ;;  %v1512_v25 = vadd.f32 %v2778_v15, %v1485_v26  ;;  %v1477_v37 = vadd.f32 %v1476_v3, %v1331_v39 }
 0x497   : > { %v1805_v51 = vpop.f32.mrf.mxu0 }
 0x498   : > { %1528 = vst.msk [vmem:[%s2783_s12 + $0x70] sm:$0xff] %vm354_vm1, %v1512_v25  ;;  %v1510_v33 = vadd.f32 %v2778_v15, %v1477_v37  ;;  %v1488_v48 = vadd.f32 %v1805_v51, %v1781_v53 }
 0x499   : > { %v1479_v4 = vpop.f32.mrf.mxu0 }
 0x49a   : > { %1526 = vst.msk [vmem:[%s2783_s12 + $0x60] sm:$0xff] %vm354_vm1, %v1510_v33  ;;  %v1513_v5 = vadd.f32 %v2778_v15, %v1488_v48  ;;  %v1480_v6 = vadd.f32 %v1479_v4, %v1334_v58 }
 0x49c   : > { %1529 = vst.msk [vmem:[%s2783_s12 + $0x78] sm:$0xff] %vm354_vm1, %v1513_v5  ;;  %v1511_v7 = vadd.f32 %v2778_v15, %v1480_v6 }
 0x49e   : > { %1527 = vst.msk [vmem:[%s2783_s12 + $0x68] sm:$0xff] %vm354_vm1, %v1511_v7 }
 0x49f   : > { %2055 = shalt.err (!%p2052_p3)
}
 0x4a0   : > { %s2056_s29 = scalar_lea.hbm %s2832_s19, 2048  ;;  %s2060_s23 = scalar_lea.hbm %s2889_s7, 4096 }
 0x4a1   : > { %p2057_p11 = scmp.ne.s32.totalorder %s2832_s19, %s2056_s29  ;;  %p2061_p4 = scmp.lt.s32.totalorder %s2832_s19, %s2889_s7 }
 0x4a2   : > { %p2062_p6 = scmp.lt.s32.totalorder %s2060_s23, %s2056_s29 }
 0x4a3   : > { %p2058_p9 = pnand %p2057_p11, %p2976_p2 }
 0x4a4   : > { %p2063_p8 = por %p2062_p6, %p2061_p4 }
 0x4a5   : > { %p2059_p1 = pneg %p2058_p9 }
 0x4a7   : > { %p2064_p10 = pnand %p2063_p8, %p2059_p1 }
 0x4a9   : > { %2067 = shalt.err (!%p2064_p10)
}
 0x4aa   : > { %s2123_s16 = smov 128   ;;  %s2124_s20 = smov 8  }
 0x4ab   : > { %1816 = dma.vmem_to_hbm [thread:$0]  (%p2976_p2), %s2834_s14, 2048, %s2832_s19, %s1531_s28, %s2123_s16, %s2123_s16, %s2124_s20  }
 0x4ac PF: > { %s1560_s11 = sand.u32 1, %s2098_s24   ;;  %p2977_p7 = scmp.ne.s32.totalorder %s2920_s8, 0 }
 0x4ad   : > { %p2978_p12 = scmp.ge.s32.totalorder %s2110_s27, 2  ;;  %s1561_s30 = scalar_lea.sflag [#allocation4], %s1560_s11 }
 0x4af   : > { %p1830_p13 = pnand %p2978_p12, %p2977_p7 }
 0x4b1   : > { %p1831_p0 = pneg %p1830_p13 }
 0x4b3   : > { %2093 = dma.done.wait (%p1831_p0), %s1561_s30, 2048  }
 0x4b4   : > { %2095 = vsyncadd (%p1831_p0), %s1561_s30, 4294965248  ;;  %p21_p5 = scmp.ge.s32.totalorder %s2240_s10, 4   ;;  %s2979_s24 = smov %s2102_s25 }
 0x4b5   : > { %s2980_s25 = smov %s2106_s26  ;;  %s2981_s26 = smov %s2249_s15 }
 0x4b6   : > { %s2982_s27 = smov %s2240_s10  ;;  %23 = sbr.rel (!%p21_p5) target bundleno = 8 (0x8), region = 101 }
 0x4bb   :  { %1566 = vsyncpa [#allocation3], 1 }
 0x4bc   :  { %1568 = vsyncpa [#allocation3 + $0x1], 1 }
 0x4bd   :  { %1569 = vsyncpa [#allocation6], 1 }
 0x4be   :  { %1570 = vsyncpa [#allocation4], 1 }
 0x4bf   :  { %1572 = vsyncpa [#allocation4 + $0x1], 1 }

</bundles_post_ra>
